<compile_context>
chip_gen: v7x
topology: tpu7x:2x2x1
jax: 0.10.0
libtpu: 0.0.40
codegen_flags: <defaults>
</compile_context>

<pallas_src>
import functools

import jax
import jax.numpy as jnp
from jax.experimental import pallas as pl
from jax.experimental.pallas import tpu as pltpu


def fused_cnn_kernel(patches_ref, wc_ref, wl_ref, bl_ref, out_ref):
    # patches_ref: (Kp, TB*HW)     im2col patches for TB images; k on sublanes,
    #                              lane = n*HW + pixel; row K holds the constant 1.0
    #                              "bias lane", rows K+1..Kp-1 are zero padding.
    # wc_ref:      (Cout, Kp)      conv weight, (kh,kw,cin)-flattened, column K = conv bias.
    # wl_ref:      (HW, Cout*NCp)  linear weight, wl[p, c*NCp + o] = lin_w[o, c*HW + p].
    # bl_ref:      (1, NCp)        linear bias, padded classes set to -1e30.
    # out_ref:     (TB, NCp)       softmax probabilities (padded classes == 0).
    Cout = wc_ref.shape[0]
    NCp = bl_ref.shape[1]
    HW = wl_ref.shape[0]
    TB = out_ref.shape[0]

    # Conv + bias + ReLU for all TB images: ONE lane-dense MXU matmul.
    actT = jnp.maximum(
        jnp.dot(wc_ref[...], patches_ref[...],
                preferred_element_type=jnp.float32),
        0.0)                                                    # (Cout, TB*HW)

    wl = wl_ref[...]                                            # hoist resident loads
    bl = bl_ref[...]

    rows = []
    for n in range(TB):                                         # static, TB small
        a = actT[:, n * HW:(n + 1) * HW]                        # (Cout, HW), 128-aligned
        # Z[c, c'*NCp + o] = sum_p a[c, p] * wl[p, c'*NCp + o]; the PyTorch (c,h,w)
        # flatten contraction is the block diagonal c == c'.
        z = jnp.dot(a, wl, preferred_element_type=jnp.float32)  # (Cout, Cout*NCp)
        logits = bl
        for c in range(Cout):
            logits = logits + z[c:c + 1, c * NCp:(c + 1) * NCp]  # (1, NCp), aligned slices
        # Softmax over the lane axis; padded classes carry -1e30 bias -> exp == 0.
        m = jnp.max(logits, axis=-1, keepdims=True)
        e = jnp.exp(logits - m)
        rows.append(e / jnp.sum(e, axis=-1, keepdims=True))
    out_ref[...] = jnp.concatenate(rows, axis=0)


@functools.partial(jax.jit, static_argnames=("kernel_size",))
def cnn_forward(images_nchw, conv_w, conv_b, lin_w, lin_b, *, kernel_size):
    N, Cin, H, W = images_nchw.shape
    Cout = conv_w.shape[0]
    n_classes = lin_w.shape[0]
    KH = KW = kernel_size
    pad = kernel_size // 2
    K = KH * KW * Cin
    HW = H * W
    Kp = 128          # pad conv contraction dim (incl. bias lane) to a full lane width
    NCp = 128         # pad class dim to a full lane width (lane-dense output stores)
    f32 = jnp.float32
    assert K + 1 <= Kp and n_classes <= NCp and Cout <= 8

    # Batch tiling: TB images per grid step (single step for small batches; block
    # shapes stay (8,128)-legal: either full-array or TB a multiple of 8).
    if N <= 8:
        TB, Np = N, N
    else:
        TB = 8
        Np = ((N + TB - 1) // TB) * TB

    # --- im2col in the wrapper: patch[k, n*HW + p], k = (kh*KW + kw)*Cin + cin, p = h*W + w.
    x = jnp.transpose(images_nchw, (0, 2, 3, 1)).astype(f32)                 # NHWC
    xp = jnp.pad(x, ((0, 0), (pad, pad), (pad, pad), (0, 0)))
    cols = [xp[:, kh:kh + H, kw:kw + W, :] for kh in range(KH) for kw in range(KW)]
    patches = jnp.concatenate(cols, axis=-1).reshape(N, HW, K)               # (N, HW, K)
    ones = jnp.ones((N, HW, 1), f32)                                         # bias lane
    patches = jnp.concatenate([patches, ones], axis=-1)                      # (N, HW, K+1)
    patches = jnp.pad(patches, ((0, Np - N), (0, 0), (0, Kp - K - 1)))       # (Np, HW, Kp)
    patches_t = jnp.transpose(patches, (2, 0, 1)).reshape(Kp, Np * HW)       # (Kp, Np*HW)

    # --- conv weight (Cout, Cin, KH, KW) -> (Cout, K) in (kh, kw, cin) order;
    #     bias folded into column K; pad to Kp.
    wc_t = jnp.transpose(conv_w, (0, 2, 3, 1)).reshape(Cout, K).astype(f32)
    wc_t = jnp.concatenate([wc_t, conv_b.reshape(Cout, 1).astype(f32)], axis=1)
    wc_t = jnp.pad(wc_t, ((0, 0), (0, Kp - K - 1)))                          # (Cout, Kp)

    # --- linear weight: fold PyTorch's (c, h, w) flatten order into the weight so the
    #     conv activation needs no transpose:  wl[p, c*NCp + o] = lin_w[o, c*HW + p].
    wl = lin_w.reshape(n_classes, Cout, HW).transpose(2, 1, 0).astype(f32)   # (HW, Cout, ncls)
    wl = jnp.pad(wl, ((0, 0), (0, 0), (0, NCp - n_classes)))
    wl = wl.reshape(HW, Cout * NCp)
    bl = jnp.pad(lin_b.reshape(1, n_classes).astype(f32),
                 ((0, 0), (0, NCp - n_classes)), constant_values=-1e30)

    out = pl.pallas_call(
        fused_cnn_kernel,
        out_shape=jax.ShapeDtypeStruct((Np, NCp), f32),
        grid=(Np // TB,),
        in_specs=[
            pl.BlockSpec((Kp, TB * HW), lambda b: (0, b)),        # per-step batch tile
            pl.BlockSpec((Cout, Kp), lambda b: (0, 0)),           # conv weight (resident)
            pl.BlockSpec((HW, Cout * NCp), lambda b: (0, 0)),     # linear weight (resident)
            pl.BlockSpec((1, NCp), lambda b: (0, 0)),             # linear bias (resident)
        ],
        out_specs=pl.BlockSpec((TB, NCp), lambda b: (b, 0)),
        compiler_params=pltpu.CompilerParams(
            dimension_semantics=("parallel",)),                   # megacore when grid > 1
    )(patches_t, wc_t, wl, bl)

    return out[:N, :n_classes]


def cnn_reference(images_nchw, conv_w, conv_b, lin_w, lin_b, *, kernel_size):
    # Pure-JAX reference matching PyTorch semantics, for verification.
    pad = kernel_size // 2
    out = jax.lax.conv_general_dilated(
        images_nchw, conv_w, window_strides=(1, 1),
        padding=((pad, pad), (pad, pad)),
        dimension_numbers=("NCHW", "OIHW", "NCHW"))
    out = jnp.maximum(out + conv_b.reshape(1, -1, 1, 1), 0.0)
    flat = out.reshape(images_nchw.shape[0], -1)
    logits = flat @ lin_w.T + lin_b
    return jax.nn.softmax(logits, axis=1)


if __name__ == "__main__":
    # Shapes consistent with the module:
    # im_size=(3, 16, 16), hidden_dim=8, kernel_size=3, n_classes=10, batch=2
    N, C, H, W = 2, 3, 16, 16
    hidden_dim, kernel_size, n_classes = 8, 3, 10

    key = jax.random.PRNGKey(0)
    k1, k2, k3, k4, k5 = jax.random.split(key, 5)
    images = jax.random.normal(k1, (N, C, H, W), jnp.float32)
    conv_w = 0.1 * jax.random.normal(
        k2, (hidden_dim, C, kernel_size, kernel_size), jnp.float32)
    conv_b = 0.1 * jax.random.normal(k3, (hidden_dim,), jnp.float32)
    lin_w = 0.01 * jax.random.normal(
        k4, (n_classes, hidden_dim * H * W), jnp.float32)
    lin_b = 0.1 * jax.random.normal(k5, (n_classes,), jnp.float32)

    scores = cnn_forward(images, conv_w, conv_b, lin_w, lin_b,
                         kernel_size=kernel_size)
    scores = jax.block_until_ready(scores)

    ref = cnn_reference(images, conv_w, conv_b, lin_w, lin_b,
                        kernel_size=kernel_size)
    assert scores.shape == (N, n_classes)
    assert jnp.allclose(scores, ref, atol=1e-5, rtol=1e-5), "mismatch vs reference"
    print("KERNEL_OK")
</pallas_src>

<mosaic_0001>
module attributes {stable_mosaic.version = 11 : i64} {
  func.func @fused_cnn_kernel(%arg0: i32, %arg1: memref<128x512xf32, #tpu.memory_space<vmem>>, %arg2: memref<8x128xf32, #tpu.memory_space<vmem>>, %arg3: memref<256x1024xf32, #tpu.memory_space<vmem>>, %arg4: memref<1x128xf32, #tpu.memory_space<vmem>>, %arg5: memref<2x128xf32, #tpu.memory_space<vmem>>) attributes {dimension_semantics = [#tpu.dimension_semantics<parallel>], iteration_bounds = array<i64: 1>, scalar_prefetch = 0 : i64, scratch_operands = 0 : i64, tpu.core_type = #tpu.core_type<tc>, window_params = [{transform_indices = @transform_0, window_bounds = array<i64: 128, 512>}, {pipeline_mode = #tpu.pipeline_mode<synchronous>, transform_indices = @transform_1, window_bounds = array<i64: 8, 128>}, {pipeline_mode = #tpu.pipeline_mode<synchronous>, transform_indices = @transform_2, window_bounds = array<i64: 256, 1024>}, {pipeline_mode = #tpu.pipeline_mode<synchronous>, transform_indices = @transform_3, window_bounds = array<i64: 1, 128>}, {transform_indices = @transform_4, window_bounds = array<i64: 2, 128>}]} {
    %c0 = arith.constant 0 : index
    %c0_0 = arith.constant 0 : index
    %0 = vector.load %arg2[%c0, %c0_0] : memref<8x128xf32, #tpu.memory_space<vmem>>, vector<8x128xf32>
    %c0_1 = arith.constant 0 : index
    %c0_2 = arith.constant 0 : index
    %1 = vector.load %arg1[%c0_1, %c0_2] : memref<128x512xf32, #tpu.memory_space<vmem>>, vector<128x512xf32>
    %cst = arith.constant dense<0.000000e+00> : vector<8x512xf32>
    %2 = tpu.matmul %0, %1, %cst {dimension_numbers = #tpu.dot_dimension_numbers<[1], [0], [0], [1], [0, 0, 1, 1], [], []>} : vector<8x128xf32>, vector<128x512xf32>, vector<8x512xf32> -> vector<8x512xf32>
    %cst_3 = arith.constant 0.000000e+00 : f32
    %3 = vector.broadcast %cst_3 : f32 to vector<8x512xf32>
    %4 = arith.maximumf %2, %3 : vector<8x512xf32>
    %c0_4 = arith.constant 0 : index
    %c0_5 = arith.constant 0 : index
    %5 = vector.load %arg3[%c0_4, %c0_5] : memref<256x1024xf32, #tpu.memory_space<vmem>>, vector<256x1024xf32>
    %c0_6 = arith.constant 0 : index
    %c0_7 = arith.constant 0 : index
    %6 = vector.load %arg4[%c0_6, %c0_7] : memref<1x128xf32, #tpu.memory_space<vmem>>, vector<1x128xf32>
    %7 = vector.extract_strided_slice %4 {offsets = [0, 0], sizes = [8, 256], strides = [1, 1]} : vector<8x512xf32> to vector<8x256xf32>
    %cst_8 = arith.constant dense<0.000000e+00> : vector<8x1024xf32>
    %8 = tpu.matmul %7, %5, %cst_8 {dimension_numbers = #tpu.dot_dimension_numbers<[1], [0], [0], [1], [0, 0, 1, 1], [], []>} : vector<8x256xf32>, vector<256x1024xf32>, vector<8x1024xf32> -> vector<8x1024xf32>
    %9 = vector.extract_strided_slice %8 {offsets = [0, 0], sizes = [1, 128], strides = [1, 1]} : vector<8x1024xf32> to vector<1x128xf32>
    %10 = arith.addf %6, %9 : vector<1x128xf32>
    %11 = vector.extract_strided_slice %8 {offsets = [1, 128], sizes = [1, 128], strides = [1, 1]} : vector<8x1024xf32> to vector<1x128xf32>
    %12 = arith.addf %10, %11 : vector<1x128xf32>
    %13 = vector.extract_strided_slice %8 {offsets = [2, 256], sizes = [1, 128], strides = [1, 1]} : vector<8x1024xf32> to vector<1x128xf32>
    %14 = arith.addf %12, %13 : vector<1x128xf32>
    %15 = vector.extract_strided_slice %8 {offsets = [3, 384], sizes = [1, 128], strides = [1, 1]} : vector<8x1024xf32> to vector<1x128xf32>
    %16 = arith.addf %14, %15 : vector<1x128xf32>
    %17 = vector.extract_strided_slice %8 {offsets = [4, 512], sizes = [1, 128], strides = [1, 1]} : vector<8x1024xf32> to vector<1x128xf32>
    %18 = arith.addf %16, %17 : vector<1x128xf32>
    %19 = vector.extract_strided_slice %8 {offsets = [5, 640], sizes = [1, 128], strides = [1, 1]} : vector<8x1024xf32> to vector<1x128xf32>
    %20 = arith.addf %18, %19 : vector<1x128xf32>
    %21 = vector.extract_strided_slice %8 {offsets = [6, 768], sizes = [1, 128], strides = [1, 1]} : vector<8x1024xf32> to vector<1x128xf32>
    %22 = arith.addf %20, %21 : vector<1x128xf32>
    %23 = vector.extract_strided_slice %8 {offsets = [7, 896], sizes = [1, 128], strides = [1, 1]} : vector<8x1024xf32> to vector<1x128xf32>
    %24 = arith.addf %22, %23 : vector<1x128xf32>
    %cst_9 = arith.constant dense<0xFF800000> : vector<1xf32>
    %25 = vector.multi_reduction <maximumf>, %24, %cst_9 [1] : vector<1x128xf32> to vector<1xf32>
    %26 = vector.shape_cast %25 : vector<1xf32> to vector<1x1xf32>
    %27 = vector.broadcast %26 : vector<1x1xf32> to vector<1x128xf32>
    %28 = arith.subf %24, %27 : vector<1x128xf32>
    %29 = math.exp %28 : vector<1x128xf32>
    %cst_10 = arith.constant dense<0.000000e+00> : vector<1xf32>
    %30 = vector.multi_reduction <add>, %29, %cst_10 [1] : vector<1x128xf32> to vector<1xf32>
    %31 = vector.shape_cast %30 : vector<1xf32> to vector<1x1xf32>
    %32 = vector.broadcast %31 : vector<1x1xf32> to vector<1x128xf32>
    %33 = arith.divf %29, %32 : vector<1x128xf32>
    %34 = vector.extract_strided_slice %4 {offsets = [0, 256], sizes = [8, 256], strides = [1, 1]} : vector<8x512xf32> to vector<8x256xf32>
    %cst_11 = arith.constant dense<0.000000e+00> : vector<8x1024xf32>
    %35 = tpu.matmul %34, %5, %cst_11 {dimension_numbers = #tpu.dot_dimension_numbers<[1], [0], [0], [1], [0, 0, 1, 1], [], []>} : vector<8x256xf32>, vector<256x1024xf32>, vector<8x1024xf32> -> vector<8x1024xf32>
    %36 = vector.extract_strided_slice %35 {offsets = [0, 0], sizes = [1, 128], strides = [1, 1]} : vector<8x1024xf32> to vector<1x128xf32>
    %37 = arith.addf %6, %36 : vector<1x128xf32>
    %38 = vector.extract_strided_slice %35 {offsets = [1, 128], sizes = [1, 128], strides = [1, 1]} : vector<8x1024xf32> to vector<1x128xf32>
    %39 = arith.addf %37, %38 : vector<1x128xf32>
    %40 = vector.extract_strided_slice %35 {offsets = [2, 256], sizes = [1, 128], strides = [1, 1]} : vector<8x1024xf32> to vector<1x128xf32>
    %41 = arith.addf %39, %40 : vector<1x128xf32>
    %42 = vector.extract_strided_slice %35 {offsets = [3, 384], sizes = [1, 128], strides = [1, 1]} : vector<8x1024xf32> to vector<1x128xf32>
    %43 = arith.addf %41, %42 : vector<1x128xf32>
    %44 = vector.extract_strided_slice %35 {offsets = [4, 512], sizes = [1, 128], strides = [1, 1]} : vector<8x1024xf32> to vector<1x128xf32>
    %45 = arith.addf %43, %44 : vector<1x128xf32>
    %46 = vector.extract_strided_slice %35 {offsets = [5, 640], sizes = [1, 128], strides = [1, 1]} : vector<8x1024xf32> to vector<1x128xf32>
    %47 = arith.addf %45, %46 : vector<1x128xf32>
    %48 = vector.extract_strided_slice %35 {offsets = [6, 768], sizes = [1, 128], strides = [1, 1]} : vector<8x1024xf32> to vector<1x128xf32>
    %49 = arith.addf %47, %48 : vector<1x128xf32>
    %50 = vector.extract_strided_slice %35 {offsets = [7, 896], sizes = [1, 128], strides = [1, 1]} : vector<8x1024xf32> to vector<1x128xf32>
    %51 = arith.addf %49, %50 : vector<1x128xf32>
    %cst_12 = arith.constant dense<0xFF800000> : vector<1xf32>
    %52 = vector.multi_reduction <maximumf>, %51, %cst_12 [1] : vector<1x128xf32> to vector<1xf32>
    %53 = vector.shape_cast %52 : vector<1xf32> to vector<1x1xf32>
    %54 = vector.broadcast %53 : vector<1x1xf32> to vector<1x128xf32>
    %55 = arith.subf %51, %54 : vector<1x128xf32>
    %56 = math.exp %55 : vector<1x128xf32>
    %cst_13 = arith.constant dense<0.000000e+00> : vector<1xf32>
    %57 = vector.multi_reduction <add>, %56, %cst_13 [1] : vector<1x128xf32> to vector<1xf32>
    %58 = vector.shape_cast %57 : vector<1xf32> to vector<1x1xf32>
    %59 = vector.broadcast %58 : vector<1x1xf32> to vector<1x128xf32>
    %60 = arith.divf %56, %59 : vector<1x128xf32>
    %61 = tpu.concatenate %33, %60 in 0 : vector<1x128xf32>, vector<1x128xf32> -> vector<2x128xf32>
    %c0_14 = arith.constant 0 : index
    %c0_15 = arith.constant 0 : index
    %62 = vector.load %arg5[%c0_14, %c0_15] : memref<2x128xf32, #tpu.memory_space<vmem>>, vector<2x128xf32>
    tpu.vector_store %arg5[%c0_14, %c0_15], %61 {strides = array<i32>} : memref<2x128xf32, #tpu.memory_space<vmem>>, vector<2x128xf32>,
    return
  }
  func.func @transform_0(%arg0: i32) -> (i32, i32) {
    %c0_i32 = arith.constant 0 : i32
    %c0_i32_0 = arith.constant 0 : i32
    return %c0_i32, %arg0 : i32, i32
  }
  func.func @transform_1(%arg0: i32) -> (i32, i32) {
    %c0_i32 = arith.constant 0 : i32
    %c0_i32_0 = arith.constant 0 : i32
    %c0_i32_1 = arith.constant 0 : i32
    return %c0_i32, %c0_i32_0 : i32, i32
  }
  func.func @transform_2(%arg0: i32) -> (i32, i32) {
    %c0_i32 = arith.constant 0 : i32
    %c0_i32_0 = arith.constant 0 : i32
    %c0_i32_1 = arith.constant 0 : i32
    return %c0_i32, %c0_i32_0 : i32, i32
  }
  func.func @transform_3(%arg0: i32) -> (i32, i32) {
    %c0_i32 = arith.constant 0 : i32
    %c0_i32_0 = arith.constant 0 : i32
    %c0_i32_1 = arith.constant 0 : i32
    return %c0_i32, %c0_i32_0 : i32, i32
  }
  func.func @transform_4(%arg0: i32) -> (i32, i32) {
    %c0_i32 = arith.constant 0 : i32
    %c0_i32_0 = arith.constant 0 : i32
    return %arg0, %c0_i32 : i32, i32
  }
}

</mosaic_0001>

<bundles_post_ra>
// kernel: cnn_forward.1
= control target key start
LH: loop header
LB: loop body
LE: loop exit
PB: predicated region body
PF: predicated region fallthrough
CT: control target
= control target key end

     0   :  { %v1974_v7 = vmov 0.0   ;;  %s3559_s0 = inlined_call_operand.vmem [shape: f32[128,512], index: 0, kind: input, shape index: {}]   ;;  %s3560_s1 = inlined_call_operand.vmem [shape: f32[8,128], index: 1, kind: input, shape index: {}]   ;;  %s3561_s2 = inlined_call_operand.vmem [shape: f32[256,1024], index: 2, kind: input, shape index: {}]   ;;  %s3562_s3 = inlined_call_operand.vmem [shape: f32[1,128], index: 3, kind: input, shape index: {}]   ;;  %s3563_s4 = inlined_call_operand.hbm [shape: f32[2,128], index: 4, kind: output, shape index: {}]  }
   0x1   :  { %v20_v0 = vld [vmem:[%s3559_s0 + $0x8] sm:$0xff]  ;;  %v19_v2 = vld [vmem:[%s3559_s0] sm:$0xff]  ;;  %147 = vmatprep.mubr.f32.mxu0 %v1974_v7  ;;  %218 = vmatprep.mubr.f32.mxu1 %v1974_v7  ;;  %v22_v28 = vld [vmem:[%s3559_s0 + $0x18] sm:$0xff] }
   0x2   :  { %v24_v1 = vld [vmem:[%s3559_s0 + $0x28] sm:$0xff]  ;;  %v23_v4 = vld [vmem:[%s3559_s0 + $0x20] sm:$0xff]  ;;  %v26_v29 = vld [vmem:[%s3559_s0 + $0x38] sm:$0xff] }
   0x3   :  { %v1363_v3 = vpack.c.bf16 %v24_v1, %v20_v0  ;;  %v28_v5 = vld [vmem:[%s3559_s0 + $0x48] sm:$0xff]  ;;  %v1365_v8 = vpack.c.bf16 %v23_v4, %v19_v2  ;;  %v27_v10 = vld [vmem:[%s3559_s0 + $0x40] sm:$0xff]  ;;  %v21_v30 = vld [vmem:[%s3559_s0 + $0x10] sm:$0xff]  ;;  %v1395_v32 = vpack.c.bf16 %v26_v29, %v22_v28 }
   0x4   :  { %v32_v6 = vld [vmem:[%s3559_s0 + $0x68] sm:$0xff]  ;;  %v31_v11 = vld [vmem:[%s3559_s0 + $0x60] sm:$0xff]  ;;  %v25_v33 = vld [vmem:[%s3559_s0 + $0x30] sm:$0xff] }
   0x5   :  { %v1367_v9 = vpack.c.bf16 %v32_v6, %v28_v5  ;;  %v36_v12 = vld [vmem:[%s3559_s0 + $0x88] sm:$0xff]  ;;  %1364 = vmatprep.subr.bf16.mxu0 %v1363_v3  ;;  %v1369_v14 = vpack.c.bf16 %v31_v11, %v27_v10  ;;  %v35_v16 = vld [vmem:[%s3559_s0 + $0x80] sm:$0xff]  ;;  %v30_v34 = vld [vmem:[%s3559_s0 + $0x58] sm:$0xff]  ;;  %v1397_v37 = vpack.c.bf16 %v25_v33, %v21_v30  ;;  %1396 = vmatprep.subr.bf16.mxu1 %v1395_v32 }
   0x6   :  { %v40_v13 = vld [vmem:[%s3559_s0 + $0xa8] sm:$0xff]  ;;  %1366 = vmatpush1.bf16.msra.mxu0 %v1365_v8  ;;  %v39_v17 = vld [vmem:[%s3559_s0 + $0xa0] sm:$0xff]  ;;  %v34_v35 = vld [vmem:[%s3559_s0 + $0x78] sm:$0xff] }
   0x7   :  { %1368 = vmatprep.subr.bf16.mxu0 %v1367_v9  ;;  %v1371_v15 = vpack.c.bf16 %v40_v13, %v36_v12  ;;  %v44_v18 = vld [vmem:[%s3559_s0 + $0xc8] sm:$0xff]  ;;  %v1373_v20 = vpack.c.bf16 %v39_v17, %v35_v16  ;;  %v43_v22 = vld [vmem:[%s3559_s0 + $0xc0] sm:$0xff]  ;;  %v1399_v38 = vpack.c.bf16 %v34_v35, %v30_v34  ;;  %v29_v39 = vld [vmem:[%s3559_s0 + $0x50] sm:$0xff]  ;;  %1398 = vmatpush1.bf16.msra.mxu1 %v1397_v37 }
   0x8   :  { %v48_v19 = vld [vmem:[%s3559_s0 + $0xe8] sm:$0xff]  ;;  %v47_v23 = vld [vmem:[%s3559_s0 + $0xe0] sm:$0xff]  ;;  %v33_v40 = vld [vmem:[%s3559_s0 + $0x70] sm:$0xff] }
   0x9   :  { %v1375_v21 = vpack.c.bf16 %v48_v19, %v44_v18  ;;  %v52_v24 = vld [vmem:[%s3559_s0 + $0x108] sm:$0xff]  ;;  %v51_v26 = vld [vmem:[%s3559_s0 + $0x100] sm:$0xff]  ;;  %v1377_v31 = vpack.c.bf16 %v47_v23, %v43_v22  ;;  %v38_v41 = vld [vmem:[%s3559_s0 + $0x98] sm:$0xff]  ;;  %v1401_v45 = vpack.c.bf16 %v33_v40, %v29_v39  ;;  %1400 = vmatprep.subr.bf16.mxu1 %v1399_v38 }
   0xa   :  { %1370 = vmatpush1.bf16.msra.mxu0 %v1369_v14  ;;  %v56_v25 = vld [vmem:[%s3559_s0 + $0x128] sm:$0xff]  ;;  %v55_v27 = vld [vmem:[%s3559_s0 + $0x120] sm:$0xff]  ;;  %v42_v44 = vld [vmem:[%s3559_s0 + $0xb8] sm:$0xff] }
   0xb   :  { %1372 = vmatprep.subr.bf16.mxu0 %v1371_v15  ;;  %v1379_v36 = vpack.c.bf16 %v56_v25, %v52_v24  ;;  %v60_v42 = vld [vmem:[%s3559_s0 + $0x148] sm:$0xff]  ;;  %v1381_v46 = vpack.c.bf16 %v55_v27, %v51_v26  ;;  %v59_v47 = vld [vmem:[%s3559_s0 + $0x140] sm:$0xff]  ;;  %v1403_v48 = vpack.c.bf16 %v42_v44, %v38_v41  ;;  %v37_v49 = vld [vmem:[%s3559_s0 + $0x90] sm:$0xff]  ;;  %1402 = vmatpush1.bf16.msra.mxu1 %v1401_v45 }
   0xc   :  { %v64_v43 = vld [vmem:[%s3559_s0 + $0x168] sm:$0xff]  ;;  %v41_v50 = vld [vmem:[%s3559_s0 + $0xb0] sm:$0xff]  ;;  %v63_v52 = vld [vmem:[%s3559_s0 + $0x160] sm:$0xff] }
   0xd   :  { %v1383_v51 = vpack.c.bf16 %v64_v43, %v60_v42  ;;  %v46_v53 = vld [vmem:[%s3559_s0 + $0xd8] sm:$0xff]  ;;  %v68_v55 = vld [vmem:[%s3559_s0 + $0x188] sm:$0xff]  ;;  %v1405_v57 = vpack.c.bf16 %v41_v50, %v37_v49  ;;  %v1385_v58 = vpack.c.bf16 %v63_v52, %v59_v47  ;;  %v67_v59 = vld [vmem:[%s3559_s0 + $0x180] sm:$0xff]  ;;  %1404 = vmatprep.subr.bf16.mxu1 %v1403_v48 }
   0xe   :  { %1374 = vmatpush1.bf16.msra.mxu0 %v1373_v20  ;;  %v50_v54 = vld [vmem:[%s3559_s0 + $0xf8] sm:$0xff]  ;;  %v72_v56 = vld [vmem:[%s3559_s0 + $0x1a8] sm:$0xff]  ;;  %v45_v61 = vld [vmem:[%s3559_s0 + $0xd0] sm:$0xff] }
   0xf   :  { %1376 = vmatprep.subr.bf16.mxu0 %v1375_v21  ;;  %v1407_v60 = vpack.c.bf16 %v50_v54, %v46_v53  ;;  %v49_v62 = vld [vmem:[%s3559_s0 + $0xf0] sm:$0xff]  ;;  %v1387_v63 = vpack.c.bf16 %v72_v56, %v68_v55  ;;  %v71_v0 = vld [vmem:[%s3559_s0 + $0x1a0] sm:$0xff]  ;;  %v54_v1 = vld [vmem:[%s3559_s0 + $0x118] sm:$0xff]  ;;  %1406 = vmatpush1.bf16.msra.mxu1 %v1405_v57 }
  0x10   :  { %v58_v2 = vld [vmem:[%s3559_s0 + $0x138] sm:$0xff]  ;;  %v76_v3 = vld [vmem:[%s3559_s0 + $0x1c8] sm:$0xff]  ;;  %v1409_v5 = vpack.c.bf16 %v49_v62, %v45_v61  ;;  %v1389_v6 = vpack.c.bf16 %v71_v0, %v67_v59  ;;  %v75_v7 = vld [vmem:[%s3559_s0 + $0x1c0] sm:$0xff] }
  0x11   :  { %v80_v4 = vld [vmem:[%s3559_s0 + $0x1e8] sm:$0xff]  ;;  %1408 = vmatprep.subr.bf16.mxu1 %v1407_v60  ;;  %v1411_v8 = vpack.c.bf16 %v58_v2, %v54_v1  ;;  %v53_v9 = vld [vmem:[%s3559_s0 + $0x110] sm:$0xff]  ;;  %v79_v12 = vld [vmem:[%s3559_s0 + $0x1e0] sm:$0xff] }
  0x12   :  { %1378 = vmatpush1.bf16.msra.mxu0 %v1377_v31  ;;  %v57_v10 = vld [vmem:[%s3559_s0 + $0x130] sm:$0xff]  ;;  %v1391_v11 = vpack.c.bf16 %v80_v4, %v76_v3  ;;  %v62_v13 = vld [vmem:[%s3559_s0 + $0x158] sm:$0xff]  ;;  %v230_v15 = vld [vmem:[%s3561_s2 + $0x8] sm:$0xff]  ;;  %v1393_v18 = vpack.c.bf16 %v79_v12, %v75_v7 }
  0x13   :  { %1380 = vmatprep.subr.bf16.mxu0 %v1379_v36  ;;  %v66_v14 = vld [vmem:[%s3559_s0 + $0x178] sm:$0xff]  ;;  %v238_v16 = vld [vmem:[%s3561_s2 + $0x48] sm:$0xff]  ;;  %1410 = vmatpush1.bf16.msra.mxu1 %v1409_v5  ;;  %v1413_v17 = vpack.c.bf16 %v57_v10, %v53_v9  ;;  %v61_v20 = vld [vmem:[%s3559_s0 + $0x150] sm:$0xff] }
  0x14   :  { %1412 = vmatprep.subr.bf16.mxu1 %v1411_v8  ;;  %v1415_v19 = vpack.c.bf16 %v66_v14, %v62_v13  ;;  %v65_v21 = vld [vmem:[%s3559_s0 + $0x170] sm:$0xff]  ;;  %v70_v22 = vld [vmem:[%s3559_s0 + $0x198] sm:$0xff]  ;;  %v2182_v24 = vpack.c.bf16 %v238_v16, %v230_v15  ;;  %v229_v25 = vld [vmem:[%s3561_s2] sm:$0xff] }
  0x15   :  { %v74_v23 = vld [vmem:[%s3559_s0 + $0x1b8] sm:$0xff]  ;;  %v237_v26 = vld [vmem:[%s3561_s2 + $0x40] sm:$0xff]  ;;  %v246_v27 = vld [vmem:[%s3561_s2 + $0x88] sm:$0xff]  ;;  %v1417_v30 = vpack.c.bf16 %v65_v21, %v61_v20 }
  0x16   :  { %1382 = vmatpush1.bf16.msra.mxu0 %v1381_v46  ;;  %v254_v28 = vld [vmem:[%s3561_s2 + $0xc8] sm:$0xff]  ;;  %v2199_v29 = vld [vmem:[%s3560_s1] sm:$0xff]  ;;  %v1419_v31 = vpack.c.bf16 %v74_v23, %v70_v22  ;;  %v69_v32 = vld [vmem:[%s3559_s0 + $0x190] sm:$0xff]  ;;  %v2210_v35 = vpack.c.bf16 %v237_v26, %v229_v25 }
  0x17   :  { %1384 = vmatprep.subr.bf16.mxu0 %v1383_v51  ;;  %1414 = vmatpush1.bf16.msra.mxu1 %v1413_v17  ;;  %v73_v33 = vld [vmem:[%s3559_s0 + $0x1b0] sm:$0xff]  ;;  %v78_v34 = vld [vmem:[%s3559_s0 + $0x1d8] sm:$0xff]  ;;  %v2216_v37 = vpack.c.bf16 %v254_v28, %v246_v27  ;;  %v245_v38 = vld [vmem:[%s3561_s2 + $0x80] sm:$0xff] }
  0x18   :  { %1416 = vmatprep.subr.bf16.mxu1 %v1415_v19  ;;  %v82_v36 = vld [vmem:[%s3559_s0 + $0x1f8] sm:$0xff]  ;;  %v253_v39 = vld [vmem:[%s3561_s2 + $0xc0] sm:$0xff]  ;;  %v262_v40 = vld [vmem:[%s3561_s2 + $0x108] sm:$0xff]  ;;  %v1421_v42 = vpack.c.bf16 %v73_v33, %v69_v32 }
  0x19   :  { %v270_v41 = vld [vmem:[%s3561_s2 + $0x148] sm:$0xff]  ;;  %v1423_v43 = vpack.c.bf16 %v82_v36, %v78_v34  ;;  %v77_v44 = vld [vmem:[%s3559_s0 + $0x1d0] sm:$0xff]  ;;  %v232_v46 = vld [vmem:[%s3561_s2 + $0x18] sm:$0xff]  ;;  %v2241_v47 = vpack.c.bf16 %v253_v39, %v245_v38 }
  0x1a   :  { %1386 = vmatpush1.bf16.msra.mxu0 %v1385_v58  ;;  %v81_v45 = vld [vmem:[%s3559_s0 + $0x1f0] sm:$0xff]  ;;  %v240_v48 = vld [vmem:[%s3561_s2 + $0x58] sm:$0xff]  ;;  %v2247_v49 = vpack.c.bf16 %v270_v41, %v262_v40  ;;  %v261_v50 = vld [vmem:[%s3561_s2 + $0x100] sm:$0xff] }
  0x1b   :  { %1388 = vmatprep.subr.bf16.mxu0 %v1387_v63  ;;  %1418 = vmatpush1.bf16.msra.mxu1 %v1417_v30  ;;  %v269_v51 = vld [vmem:[%s3561_s2 + $0x140] sm:$0xff]  ;;  %v278_v52 = vld [vmem:[%s3561_s2 + $0x188] sm:$0xff]  ;;  %v1425_v54 = vpack.c.bf16 %v81_v45, %v77_v44  ;;  %v2261_v55 = vpack.c.bf16 %v240_v48, %v232_v46  ;;  %v231_v56 = vld [vmem:[%s3561_s2 + $0x10] sm:$0xff] }
  0x1c   :  { %1420 = vmatprep.subr.bf16.mxu1 %v1419_v31  ;;  %v286_v53 = vld [vmem:[%s3561_s2 + $0x1c8] sm:$0xff]  ;;  %v239_v57 = vld [vmem:[%s3561_s2 + $0x50] sm:$0xff]  ;;  %v248_v58 = vld [vmem:[%s3561_s2 + $0x98] sm:$0xff]  ;;  %v2273_v59 = vpack.c.bf16 %v269_v51, %v261_v50 }
  0x1d   :  { %v256_v60 = vld [vmem:[%s3561_s2 + $0xd8] sm:$0xff]  ;;  %v2279_v61 = vpack.c.bf16 %v286_v53, %v278_v52  ;;  %v277_v62 = vld [vmem:[%s3561_s2 + $0x180] sm:$0xff]  ;;  %v294_v0 = vld [vmem:[%s3561_s2 + $0x208] sm:$0xff]  ;;  %v2293_v2 = vpack.c.bf16 %v239_v57, %v231_v56 }
  0x1e   :  { %1390 = vmatpush1.bf16.msra.mxu0 %v1389_v6  ;;  %v285_v63 = vld [vmem:[%s3561_s2 + $0x1c0] sm:$0xff]  ;;  %v302_v1 = vld [vmem:[%s3561_s2 + $0x248] sm:$0xff]  ;;  %v2296_v3 = vpack.c.bf16 %v256_v60, %v248_v58  ;;  %v247_v4 = vld [vmem:[%s3561_s2 + $0x90] sm:$0xff] }
  0x1f   :  { %1392 = vmatprep.subr.bf16.mxu0 %v1391_v11  ;;  %1422 = vmatpush1.bf16.msra.mxu1 %v1421_v42  ;;  %v255_v5 = vld [vmem:[%s3561_s2 + $0xd0] sm:$0xff]  ;;  %v264_v6 = vld [vmem:[%s3561_s2 + $0x118] sm:$0xff]  ;;  %v2308_v7 = vpack.c.bf16 %v285_v63, %v277_v62  ;;  %v2314_v9 = vpack.c.bf16 %v302_v1, %v294_v0  ;;  %v293_v10 = vld [vmem:[%s3561_s2 + $0x200] sm:$0xff] }
  0x20   :  { %1424 = vmatprep.subr.bf16.mxu1 %v1423_v43  ;;  %v272_v8 = vld [vmem:[%s3561_s2 + $0x158] sm:$0xff]  ;;  %v301_v11 = vld [vmem:[%s3561_s2 + $0x240] sm:$0xff]  ;;  %v310_v12 = vld [vmem:[%s3561_s2 + $0x288] sm:$0xff]  ;;  %v2330_v14 = vpack.c.bf16 %v255_v5, %v247_v4 }
  0x21   :  { %v318_v13 = vld [vmem:[%s3561_s2 + $0x2c8] sm:$0xff]  ;;  %v2333_v15 = vpack.c.bf16 %v272_v8, %v264_v6  ;;  %v263_v16 = vld [vmem:[%s3561_s2 + $0x110] sm:$0xff]  ;;  %v2345_v19 = vpack.c.bf16 %v301_v11, %v293_v10  ;;  %v288_v20 = vld [vmem:[%s3561_s2 + $0x1d8] sm:$0xff] }
  0x22   :  { %1394 = vmatpush1.bf16.msra.mxu0 %v1393_v18  ;;  %v271_v17 = vld [vmem:[%s3561_s2 + $0x150] sm:$0xff]  ;;  %v280_v18 = vld [vmem:[%s3561_s2 + $0x198] sm:$0xff]  ;;  %v2351_v21 = vpack.c.bf16 %v318_v13, %v310_v12  ;;  %v309_v22 = vld [vmem:[%s3561_s2 + $0x280] sm:$0xff] }
  0x23   :  { %1428 = vmatprep.subr.bf16.mxu0 %v2182_v24  ;;  %1426 = vmatpush1.bf16.msra.mxu1 %v1425_v54  ;;  %v317_v23 = vld [vmem:[%s3561_s2 + $0x2c0] sm:$0xff]  ;;  %v326_v25 = vld [vmem:[%s3561_s2 + $0x308] sm:$0xff]  ;;  %v2366_v27 = vpack.c.bf16 %v271_v17, %v263_v16  ;;  %v2369_v28 = vpack.c.bf16 %v288_v20, %v280_v18  ;;  %v287_v30 = vld [vmem:[%s3561_s2 + $0x1d0] sm:$0xff] }
  0x24   :  { %1492 = vmatprep.subr.bf16.mxu1 %v2261_v55  ;;  %v334_v26 = vld [vmem:[%s3561_s2 + $0x348] sm:$0xff]  ;;  %v296_v31 = vld [vmem:[%s3561_s2 + $0x218] sm:$0xff]  ;;  %v2381_v32 = vpack.c.bf16 %v317_v23, %v309_v22  ;;  %v325_v36 = vld [vmem:[%s3561_s2 + $0x300] sm:$0xff] }
  0x25   :  { %148 = vmatmul.mubr.f32.vlgmr.msra.gmra.mrb[0].mxu0 %v2199_v29  ;;  %v304_v33 = vld [vmem:[%s3561_s2 + $0x258] sm:$0xff]  ;;  %v2387_v34 = vpack.c.bf16 %v334_v26, %v326_v25  ;;  %v333_v38 = vld [vmem:[%s3561_s2 + $0x340] sm:$0xff]  ;;  %v342_v39 = vld [vmem:[%s3561_s2 + $0x388] sm:$0xff] }
  0x26   :  { %1430 = vmatpush1.bf16.msra.mxu0 %v2210_v35  ;;  %219 = vmatmul.mubr.f32.vlgmr.msra.gmra.mrb[0].mxu1 %v2199_v29  ;;  %v279_v29 = vld [vmem:[%s3561_s2 + $0x190] sm:$0xff]  ;;  %v350_v40 = vld [vmem:[%s3561_s2 + $0x3c8] sm:$0xff]  ;;  %v2405_v42 = vpack.c.bf16 %v304_v33, %v296_v31  ;;  %v312_v45 = vld [vmem:[%s3561_s2 + $0x298] sm:$0xff]  ;;  %v2417_v46 = vpack.c.bf16 %v333_v38, %v325_v36 }
  0x27   :  { %1432 = vmatprep.subr.bf16.mxu0 %v2216_v37  ;;  %1494 = vmatpush1.bf16.msra.mxu1 %v2293_v2  ;;  %v2402_v41 = vpack.c.bf16 %v287_v30, %v279_v29  ;;  %v295_v43 = vld [vmem:[%s3561_s2 + $0x210] sm:$0xff]  ;;  %v320_v48 = vld [vmem:[%s3561_s2 + $0x2d8] sm:$0xff]  ;;  %v2423_v50 = vpack.c.bf16 %v350_v40, %v342_v39  ;;  %v341_v51 = vld [vmem:[%s3561_s2 + $0x380] sm:$0xff] }
  0x28   :  { %1496 = vmatprep.subr.bf16.mxu1 %v2296_v3  ;;  %v303_v44 = vld [vmem:[%s3561_s2 + $0x250] sm:$0xff]  ;;  %v349_v52 = vld [vmem:[%s3561_s2 + $0x3c0] sm:$0xff]  ;;  %v358_v53 = vld [vmem:[%s3561_s2 + $0x408] sm:$0xff]  ;;  %v2444_v58 = vpack.c.bf16 %v320_v48, %v312_v45 }
  0x29   :  { %v366_v54 = vld [vmem:[%s3561_s2 + $0x448] sm:$0xff]  ;;  %v2438_v56 = vpack.c.bf16 %v303_v44, %v295_v43  ;;  %v311_v57 = vld [vmem:[%s3561_s2 + $0x290] sm:$0xff]  ;;  %v328_v62 = vld [vmem:[%s3561_s2 + $0x318] sm:$0xff]  ;;  %v2456_v0 = vpack.c.bf16 %v349_v52, %v341_v51 }
  0x2a   :  { %1434 = vmatpush1.bf16.msra.mxu0 %v2241_v47  ;;  %v319_v60 = vld [vmem:[%s3561_s2 + $0x2d0] sm:$0xff]  ;;  %v336_v63 = vld [vmem:[%s3561_s2 + $0x358] sm:$0xff]  ;;  %v2459_v1 = vpack.c.bf16 %v366_v54, %v358_v53  ;;  %v357_v4 = vld [vmem:[%s3561_s2 + $0x400] sm:$0xff] }
  0x2b   :  { %1436 = vmatprep.subr.bf16.mxu0 %v2247_v49  ;;  %1498 = vmatpush1.bf16.msra.mxu1 %v2330_v14  ;;  %v365_v5 = vld [vmem:[%s3561_s2 + $0x440] sm:$0xff] }
  0x2c   :  { %1500 = vmatprep.subr.bf16.mxu1 %v2333_v15 }
  0x2e   :  { %1438 = vmatpush1.bf16.msra.mxu0 %v2273_v59 }
  0x2f   :  { %1440 = vmatprep.subr.bf16.mxu0 %v2279_v61  ;;  %1502 = vmatpush1.bf16.msra.mxu1 %v2366_v27 }
  0x30   :  { %1504 = vmatprep.subr.bf16.mxu1 %v2369_v28 }
  0x32   :  { %1442 = vmatpush1.bf16.msra.mxu0 %v2308_v7 }
  0x33   :  { %1444 = vmatprep.subr.bf16.mxu0 %v2314_v9  ;;  %1506 = vmatpush1.bf16.msra.mxu1 %v2402_v41 }
  0x34   :  { %1508 = vmatprep.subr.bf16.mxu1 %v2405_v42 }
  0x36   :  { %1446 = vmatpush1.bf16.msra.mxu0 %v2345_v19 }
  0x37   :  { %1448 = vmatprep.subr.bf16.mxu0 %v2351_v21 }
  0x3a   :  { %1450 = vmatpush1.bf16.msra.mxu0 %v2381_v32 }
  0x3b   :  { %1452 = vmatprep.subr.bf16.mxu0 %v2387_v34 }
  0x3e   :  { %1454 = vmatpush1.bf16.msra.mxu0 %v2417_v46 }
  0x3f   :  { %1456 = vmatprep.subr.bf16.mxu0 %v2423_v50 }
  0x40   :  { %9 = vsyncpa [#allocation3], 0  ;;  %v374_v6 = vld [vmem:[%s3561_s2 + $0x488] sm:$0xff]  ;;  %1510 = vmatpush1.bf16.msra.mxu1 %v2438_v56  ;;  %v2474_v10 = vpack.c.bf16 %v319_v60, %v311_v57  ;;  %v2477_v11 = vpack.c.bf16 %v336_v63, %v328_v62  ;;  %v327_v12 = vld [vmem:[%s3561_s2 + $0x310] sm:$0xff]  ;;  %v2489_v17 = vpack.c.bf16 %v365_v5, %v357_v4  ;;  %vm902_vm0 = vcmask 1040384  }
  0x41   :  { %v382_v8 = vld [vmem:[%s3561_s2 + $0x4c8] sm:$0xff]  ;;  %1512 = vmatprep.subr.bf16.mxu1 %v2444_v58  ;;  %v335_v13 = vld [vmem:[%s3561_s2 + $0x350] sm:$0xff]  ;;  %v344_v16 = vld [vmem:[%s3561_s2 + $0x398] sm:$0xff] }
  0x42   :  { %1458 = vmatpush1.bf16.msra.mxu0 %v2456_v0  ;;  %v352_v18 = vld [vmem:[%s3561_s2 + $0x3d8] sm:$0xff]  ;;  %v2495_v20 = vpack.c.bf16 %v382_v8, %v374_v6  ;;  %v373_v22 = vld [vmem:[%s3561_s2 + $0x480] sm:$0xff]  ;;  %v390_v25 = vld [vmem:[%s3561_s2 + $0x508] sm:$0xff]  ;;  %v2510_v29 = vpack.c.bf16 %v335_v13, %v327_v12 }
  0x43   :  { %1460 = vmatprep.subr.bf16.mxu0 %v2459_v1  ;;  %v381_v23 = vld [vmem:[%s3561_s2 + $0x4c0] sm:$0xff]  ;;  %v398_v26 = vld [vmem:[%s3561_s2 + $0x548] sm:$0xff]  ;;  %v2513_v30 = vpack.c.bf16 %v352_v18, %v344_v16  ;;  %v343_v31 = vld [vmem:[%s3561_s2 + $0x390] sm:$0xff] }
  0x44   :  { %1514 = vmatpush1.bf16.msra.mxu1 %v2474_v10  ;;  %v351_v33 = vld [vmem:[%s3561_s2 + $0x3d0] sm:$0xff]  ;;  %v360_v36 = vld [vmem:[%s3561_s2 + $0x418] sm:$0xff]  ;;  %v2525_v38 = vpack.c.bf16 %v381_v23, %v373_v22  ;;  %v2531_v40 = vpack.c.bf16 %v398_v26, %v390_v25  ;;  %v389_v43 = vld [vmem:[%s3561_s2 + $0x500] sm:$0xff] }
  0x45   :  { %1516 = vmatprep.subr.bf16.mxu1 %v2477_v11  ;;  %v368_v39 = vld [vmem:[%s3561_s2 + $0x458] sm:$0xff]  ;;  %v397_v44 = vld [vmem:[%s3561_s2 + $0x540] sm:$0xff]  ;;  %v406_v45 = vld [vmem:[%s3561_s2 + $0x588] sm:$0xff]  ;;  %v2546_v51 = vpack.c.bf16 %v351_v33, %v343_v31 }
  0x46   :  { %1462 = vmatpush1.bf16.msra.mxu0 %v2489_v17  ;;  %v414_v48 = vld [vmem:[%s3561_s2 + $0x5c8] sm:$0xff]  ;;  %v2549_v52 = vpack.c.bf16 %v368_v39, %v360_v36  ;;  %v359_v53 = vld [vmem:[%s3561_s2 + $0x410] sm:$0xff]  ;;  %v376_v57 = vld [vmem:[%s3561_s2 + $0x498] sm:$0xff]  ;;  %v2561_v60 = vpack.c.bf16 %v397_v44, %v389_v43 }
  0x47   :  { %1464 = vmatprep.subr.bf16.mxu0 %v2495_v20  ;;  %v367_v54 = vld [vmem:[%s3561_s2 + $0x450] sm:$0xff]  ;;  %v384_v62 = vld [vmem:[%s3561_s2 + $0x4d8] sm:$0xff]  ;;  %v2567_v63 = vpack.c.bf16 %v414_v48, %v406_v45  ;;  %v405_v4 = vld [vmem:[%s3561_s2 + $0x580] sm:$0xff] }
  0x48   :  { %1518 = vmatpush1.bf16.msra.mxu1 %v2510_v29  ;;  %v413_v5 = vld [vmem:[%s3561_s2 + $0x5c0] sm:$0xff]  ;;  %v422_v6 = vld [vmem:[%s3561_s2 + $0x608] sm:$0xff]  ;;  %v2582_v12 = vpack.c.bf16 %v367_v54, %v359_v53  ;;  %v2585_v13 = vpack.c.bf16 %v384_v62, %v376_v57  ;;  %v375_v16 = vld [vmem:[%s3561_s2 + $0x490] sm:$0xff] }
  0x49   :  { %1520 = vmatprep.subr.bf16.mxu1 %v2513_v30  ;;  %3639 = vst [vmem:[#allocation5_spill] sm:$0xff] %v2567_v63  ;;  %v430_v8 = vld [vmem:[%s3561_s2 + $0x648] sm:$0xff]  ;;  %v383_v18 = vld [vmem:[%s3561_s2 + $0x4d0] sm:$0xff]  ;;  %v392_v22 = vld [vmem:[%s3561_s2 + $0x518] sm:$0xff]  ;;  %v2597_v23 = vpack.c.bf16 %v413_v5, %v405_v4 }
  0x4a   :  { %1466 = vmatpush1.bf16.msra.mxu0 %v2525_v38  ;;  %v400_v25 = vld [vmem:[%s3561_s2 + $0x558] sm:$0xff]  ;;  %v2603_v26 = vpack.c.bf16 %v430_v8, %v422_v6  ;;  %v421_v31 = vld [vmem:[%s3561_s2 + $0x600] sm:$0xff]  ;;  %v438_v36 = vld [vmem:[%s3561_s2 + $0x688] sm:$0xff]  ;;  %v2618_v43 = vpack.c.bf16 %v383_v18, %v375_v16 }
  0x4b   :  { %1468 = vmatprep.subr.bf16.mxu0 %v2531_v40  ;;  %3640 = vst [vmem:[#allocation6_spill] sm:$0xff] %v2597_v23  ;;  %v429_v33 = vld [vmem:[%s3561_s2 + $0x640] sm:$0xff]  ;;  %v446_v39 = vld [vmem:[%s3561_s2 + $0x6c8] sm:$0xff]  ;;  %v2621_v44 = vpack.c.bf16 %v400_v25, %v392_v22  ;;  %v391_v45 = vld [vmem:[%s3561_s2 + $0x510] sm:$0xff] }
  0x4c   :  { %1522 = vmatpush1.bf16.msra.mxu1 %v2546_v51  ;;  %3641 = vst [vmem:[#allocation7_spill] sm:$0xff] %v2603_v26  ;;  %v399_v48 = vld [vmem:[%s3561_s2 + $0x550] sm:$0xff]  ;;  %v408_v53 = vld [vmem:[%s3561_s2 + $0x598] sm:$0xff]  ;;  %v2633_v54 = vpack.c.bf16 %v429_v33, %v421_v31  ;;  %v2639_v62 = vpack.c.bf16 %v446_v39, %v438_v36  ;;  %v437_v4 = vld [vmem:[%s3561_s2 + $0x680] sm:$0xff] }
  0x4d   :  { %1524 = vmatprep.subr.bf16.mxu1 %v2549_v52  ;;  %v416_v57 = vld [vmem:[%s3561_s2 + $0x5d8] sm:$0xff]  ;;  %v445_v5 = vld [vmem:[%s3561_s2 + $0x6c0] sm:$0xff]  ;;  %v454_v6 = vld [vmem:[%s3561_s2 + $0x708] sm:$0xff]  ;;  %v2654_v16 = vpack.c.bf16 %v399_v48, %v391_v45 }
  0x4e   :  { %1470 = vmatpush1.bf16.msra.mxu0 %v2561_v60  ;;  %3642 = vst [vmem:[#allocation8_spill] sm:$0xff] %v2633_v54  ;;  %3643 = vst [vmem:[#allocation9_spill] sm:$0xff] %v2639_v62  ;;  %v462_v8 = vld [vmem:[%s3561_s2 + $0x748] sm:$0xff]  ;;  %v2657_v18 = vpack.c.bf16 %v416_v57, %v408_v53  ;;  %v407_v22 = vld [vmem:[%s3561_s2 + $0x590] sm:$0xff]  ;;  %v2669_v33 = vpack.c.bf16 %v445_v5, %v437_v4 }
  0x4f   :  { %1472 = vmatprep.subr.bf16.mxu0 %v2567_v63  ;;  %v415_v25 = vld [vmem:[%s3561_s2 + $0x5d0] sm:$0xff]  ;;  %v424_v31 = vld [vmem:[%s3561_s2 + $0x618] sm:$0xff]  ;;  %v2675_v39 = vpack.c.bf16 %v462_v8, %v454_v6  ;;  %v453_v45 = vld [vmem:[%s3561_s2 + $0x700] sm:$0xff] }
  0x50   :  { %1526 = vmatpush1.bf16.msra.mxu1 %v2582_v12  ;;  %3644 = vst [vmem:[#allocation10_spill] sm:$0xff] %v2657_v18  ;;  %3645 = vst [vmem:[#allocation11_spill] sm:$0xff] %v2669_v33  ;;  %v432_v36 = vld [vmem:[%s3561_s2 + $0x658] sm:$0xff]  ;;  %v461_v48 = vld [vmem:[%s3561_s2 + $0x740] sm:$0xff]  ;;  %v2684_v53 = vpack.c.bf16 %v415_v25, %v407_v22 }
  0x51   :  { %1528 = vmatprep.subr.bf16.mxu1 %v2585_v13  ;;  %3646 = vst [vmem:[#allocation12_spill] sm:$0xff] %v2675_v39  ;;  %v2687_v57 = vpack.c.bf16 %v432_v36, %v424_v31  ;;  %v423_v4 = vld [vmem:[%s3561_s2 + $0x610] sm:$0xff]  ;;  %v2696_v6 = vpack.c.bf16 %v461_v48, %v453_v45  ;;  %v440_v8 = vld [vmem:[%s3561_s2 + $0x698] sm:$0xff] }
  0x52   :  { %1474 = vmatpush1.bf16.msra.mxu0 %v2597_v23  ;;  %3647 = vst [vmem:[#allocation13_spill] sm:$0xff] %v2684_v53  ;;  %v431_v5 = vld [vmem:[%s3561_s2 + $0x650] sm:$0xff]  ;;  %v448_v22 = vld [vmem:[%s3561_s2 + $0x6d8] sm:$0xff] }
  0x53   :  { %1476 = vmatprep.subr.bf16.mxu0 %v2603_v26  ;;  %3648 = vst [vmem:[#allocation14_spill] sm:$0xff] %v2687_v57  ;;  %3649 = vst [vmem:[#allocation15_spill] sm:$0xff] %v2696_v6  ;;  %v2706_v25 = vpack.c.bf16 %v431_v5, %v423_v4  ;;  %v2709_v31 = vpack.c.bf16 %v448_v22, %v440_v8  ;;  %v439_v36 = vld [vmem:[%s3561_s2 + $0x690] sm:$0xff]  ;;  %v456_v48 = vld [vmem:[%s3561_s2 + $0x718] sm:$0xff] }
  0x54   :  { %1530 = vmatpush1.bf16.msra.mxu1 %v2618_v43  ;;  %v447_v45 = vld [vmem:[%s3561_s2 + $0x6d0] sm:$0xff]  ;;  %v464_v4 = vld [vmem:[%s3561_s2 + $0x758] sm:$0xff] }
  0x55   :  { %1532 = vmatprep.subr.bf16.mxu1 %v2621_v44  ;;  %3650 = vst [vmem:[#allocation16_spill] sm:$0xff] %v2706_v25  ;;  %3651 = vst [vmem:[#allocation17_spill] sm:$0xff] %v2709_v31  ;;  %v2725_v5 = vpack.c.bf16 %v447_v45, %v439_v36  ;;  %v2728_v8 = vpack.c.bf16 %v464_v4, %v456_v48  ;;  %v455_v22 = vld [vmem:[%s3561_s2 + $0x710] sm:$0xff]  ;;  %v470_v36 = vld [vmem:[%s3561_s2 + $0x788] sm:$0xff] }
  0x56   :  { %1478 = vmatpush1.bf16.msra.mxu0 %v2633_v54  ;;  %v478_v45 = vld [vmem:[%s3561_s2 + $0x7c8] sm:$0xff]  ;;  %v472_v48 = vld [vmem:[%s3561_s2 + $0x798] sm:$0xff]  ;;  %v249_v54 = vld [vmem:[%s3561_s2 + $0xa0] sm:$0xff] }
  0x57   :  { %1480 = vmatprep.subr.bf16.mxu0 %v2639_v62  ;;  %3652 = vst [vmem:[#allocation18_spill] sm:$0xff] %v2725_v5  ;;  %3653 = vst [vmem:[#allocation19_spill] sm:$0xff] %v2728_v8  ;;  %v2750_v4 = vpack.c.bf16 %v478_v45, %v470_v36  ;;  %v471_v36 = vld [vmem:[%s3561_s2 + $0x790] sm:$0xff]  ;;  %v276_v23 = vld [vmem:[%s3561_s2 + $0x178] sm:$0xff] }
  0x58   :  { %1534 = vmatpush1.bf16.msra.mxu1 %v2654_v16  ;;  %v479_v45 = vld [vmem:[%s3561_s2 + $0x7d0] sm:$0xff] }
  0x59   :  { %1536 = vmatprep.subr.bf16.mxu1 %v2657_v18  ;;  %3655 = vst [vmem:[#allocation21_spill] sm:$0xff] %v2750_v4 }
  0x5a   :  { %1482 = vmatpush1.bf16.msra.mxu0 %v2669_v33  ;;  %v2772_v33 = vpack.c.bf16 %v479_v45, %v471_v36  ;;  %v244_v36 = vld [vmem:[%s3561_s2 + $0x78] sm:$0xff] }
  0x5b   :  { %1484 = vmatprep.subr.bf16.mxu0 %v2675_v39 }
  0x5c   :  { %1538 = vmatpush1.bf16.msra.mxu1 %v2684_v53  ;;  %3658 = vst [vmem:[#allocation24_spill] sm:$0xff] %v2772_v33  ;;  %v251_v53 = vld [vmem:[%s3561_s2 + $0xb0] sm:$0xff] }
  0x5d   :  { %1540 = vmatprep.subr.bf16.mxu1 %v2687_v57  ;;  %v257_v57 = vld [vmem:[%s3561_s2 + $0xe0] sm:$0xff] }
  0x5e   :  { %1486 = vmatpush1.bf16.msra.mxu0 %v2696_v6  ;;  %v463_v6 = vld [vmem:[%s3561_s2 + $0x750] sm:$0xff] }
  0x5f   :  { %v2737_v39 = vpack.c.bf16 %v463_v6, %v455_v22  ;;  %v480_v6 = vld [vmem:[%s3561_s2 + $0x7d8] sm:$0xff]  ;;  %v469_v22 = vld [vmem:[%s3561_s2 + $0x780] sm:$0xff]  ;;  %1488 = vmatprep.subr.bf16.mxu0 %v2750_v4 }
  0x60   :  { %1542 = vmatpush1.bf16.msra.mxu1 %v2706_v25  ;;  %v260_v4 = vld [vmem:[%s3561_s2 + $0xf8] sm:$0xff] }
  0x61   :  { %1544 = vmatprep.subr.bf16.mxu1 %v2709_v31  ;;  %3654 = vst [vmem:[#allocation20_spill] sm:$0xff] %v2737_v39 }
  0x64   :  { %1546 = vmatpush1.bf16.msra.mxu1 %v2725_v5 }
  0x65   :  { %1548 = vmatprep.subr.bf16.mxu1 %v2728_v8  ;;  %v2761_v8 = vpack.c.bf16 %v480_v6, %v472_v48  ;;  %v242_v48 = vld [vmem:[%s3561_s2 + $0x68] sm:$0xff]  ;;  %v236_v6 = vld [vmem:[%s3561_s2 + $0x38] sm:$0xff] }
  0x66   :  { %v2791_v45 = vpack.c.bf16 %v244_v36, %v236_v6  ;;  %v250_v36 = vld [vmem:[%s3561_s2 + $0xa8] sm:$0xff] }
  0x67   :  { %3656 = vst [vmem:[#allocation22_spill] sm:$0xff] %v2761_v8 }
  0x68   :  { %1550 = vmatpush1.bf16.msra.mxu1 %v2737_v39  ;;  %v477_v39 = vld [vmem:[%s3561_s2 + $0x7c0] sm:$0xff]  ;;  %3660 = vst [vmem:[#allocation26_spill] sm:$0xff] %v2791_v45 }
  0x69   :  { %v2763_v5 = vpack.c.bf16 %v477_v39, %v469_v22  ;;  %1552 = vmatprep.subr.bf16.mxu1 %v2761_v8  ;;  %v234_v39 = vld [vmem:[%s3561_s2 + $0x28] sm:$0xff]  ;;  %v252_v8 = vld [vmem:[%s3561_s2 + $0xb8] sm:$0xff] }
  0x6a   :  { %v2786_v22 = vpack.c.bf16 %v242_v48, %v234_v39  ;;  %v235_v39 = vld [vmem:[%s3561_s2 + $0x30] sm:$0xff] }
  0x6b   :  { %3657 = vst [vmem:[#allocation23_spill] sm:$0xff] %v2763_v5  ;;  %1490 = vmatpush1.bf16.msra.mxu0 %v2763_v5  ;;  %v233_v5 = vld [vmem:[%s3561_s2 + $0x20] sm:$0xff]  ;;  %v243_v48 = vld [vmem:[%s3561_s2 + $0x70] sm:$0xff] }
  0x6c   :  { %1554 = vmatpush1.bf16.msra.mxu1 %v2772_v33  ;;  %3659 = vst [vmem:[#allocation25_spill] sm:$0xff] %v2786_v22  ;;  %1556 = vmatprep.subr.bf16.mxu0 %v2786_v22  ;;  %v241_v33 = vld [vmem:[%s3561_s2 + $0x60] sm:$0xff]  ;;  %v258_v22 = vld [vmem:[%s3561_s2 + $0xe8] sm:$0xff]  ;;  %v2821_v25 = vpack.c.bf16 %v243_v48, %v235_v39  ;;  %v2842_v39 = vpack.c.bf16 %v260_v4, %v252_v8 }
  0x6d   :  { %1620 = vmatprep.subr.bf16.mxu1 %v2791_v45  ;;  %v2819_v62 = vpack.c.bf16 %v241_v33, %v233_v5  ;;  %v259_v33 = vld [vmem:[%s3561_s2 + $0xf0] sm:$0xff]  ;;  %v266_v5 = vld [vmem:[%s3561_s2 + $0x128] sm:$0xff]  ;;  %v2857_v8 = vpack.c.bf16 %v257_v57, %v249_v54 }
  0x6e   :  { %3662 = vst [vmem:[#allocation28_spill] sm:$0xff] %v2821_v25  ;;  %3664 = vst [vmem:[#allocation30_spill] sm:$0xff] %v2842_v39  ;;  %v274_v48 = vld [vmem:[%s3561_s2 + $0x168] sm:$0xff]  ;;  %v2859_v4 = vpack.c.bf16 %v259_v33, %v251_v53  ;;  %v267_v54 = vld [vmem:[%s3561_s2 + $0x130] sm:$0xff] }
  0x6f   :  { %3661 = vst [vmem:[#allocation27_spill] sm:$0xff] %v2819_v62  ;;  %3665 = vst [vmem:[#allocation31_spill] sm:$0xff] %v2857_v8  ;;  %v2867_v18 = vpack.c.bf16 %v274_v48, %v266_v5  ;;  %v275_v53 = vld [vmem:[%s3561_s2 + $0x170] sm:$0xff]  ;;  %v282_v57 = vld [vmem:[%s3561_s2 + $0x1a8] sm:$0xff] }
  0x70   :  { %3666 = vst [vmem:[#allocation32_spill] sm:$0xff] %v2859_v4  ;;  %v292_v33 = vld [vmem:[%s3561_s2 + $0x1f8] sm:$0xff]  ;;  %v2895_v48 = vpack.c.bf16 %v275_v53, %v267_v54  ;;  %v298_v54 = vld [vmem:[%s3561_s2 + $0x228] sm:$0xff] }
  0x71   :  { %3667 = vst [vmem:[#allocation33_spill] sm:$0xff] %v2867_v18 }
  0x72   :  { %3670 = vst [vmem:[#allocation36_spill] sm:$0xff] %v2895_v48 }
  0xf8   :  { %v149_v6 = vpop.f32.mrb[0].mxu0 }
  0xf9   :  { %v151_v45 = vpop.f32.mrb[1].mxu0  ;;  %v2829_v26 = vmax.f32 %v149_v6, 0.0  ;;  %v268_v6 = vld [vmem:[%s3561_s2 + $0x138] sm:$0xff]  ;;  %v2918_v53 = vpop.f32.mrb[0].mxu1 }
  0xfa   :  { %v226_v31 = vmax.f32 %v151_v45, 0.0  ;;  %v2840_v45 = vpack.c.bf16 %v258_v22, %v250_v36  ;;  %v265_v22 = vld [vmem:[%s3561_s2 + $0x120] sm:$0xff]  ;;  %v2869_v63 = vpack.c.bf16 %v276_v23, %v268_v6  ;;  %v290_v23 = vld [vmem:[%s3561_s2 + $0x1e8] sm:$0xff] }
  0xfb   :  { %v273_v36 = vld [vmem:[%s3561_s2 + $0x160] sm:$0xff] }
  0xfc   :  { %550 = vmatprep.mubr.f32.mxu0 %v226_v31  ;;  %621 = vmatprep.mubr.f32.mxu1 %v226_v31  ;;  %3663 = vst [vmem:[#allocation29_spill] sm:$0xff] %v2840_v45  ;;  %3668 = vst [vmem:[#allocation34_spill] sm:$0xff] %v2869_v63  ;;  %v2893_v5 = vpack.c.bf16 %v273_v36, %v265_v22  ;;  %v281_v6 = vld [vmem:[%s3561_s2 + $0x1a0] sm:$0xff]  ;;  %v283_v22 = vld [vmem:[%s3561_s2 + $0x1b0] sm:$0xff] }
  0xfd   :  { %551 = vmatmul.mubr.f32.vlgmr.msra.gmra.mrb[2].mxu0 %v2829_v26  ;;  %622 = vmatmul.mubr.f32.vlgmr.msra.gmra.mrb[2].mxu1 %v2829_v26  ;;  %v291_v36 = vld [vmem:[%s3561_s2 + $0x1f0] sm:$0xff] }
  0xfe   :  { %1558 = vmatpush1.bf16.msra.mxu0 %v2819_v62  ;;  %1622 = vmatpush1.bf16.msra.mxu1 %v2821_v25  ;;  %3669 = vst [vmem:[#allocation35_spill] sm:$0xff] %v2893_v5  ;;  %v305_v25 = vld [vmem:[%s3561_s2 + $0x260] sm:$0xff] }
  0xff   :  { %692 = vmatprep.mubr.f32.mxu0 %v226_v31  ;;  %763 = vmatprep.mubr.f32.mxu1 %v226_v31  ;;  %v284_v31 = vld [vmem:[%s3561_s2 + $0x1b8] sm:$0xff] }
 0x100   :  { %1560 = vmatprep.subr.bf16.mxu0 %v2840_v45  ;;  %1624 = vmatprep.subr.bf16.mxu1 %v2842_v39  ;;  %v289_v39 = vld [vmem:[%s3561_s2 + $0x1e0] sm:$0xff]  ;;  %v2905_v45 = vpack.c.bf16 %v290_v23, %v282_v57  ;;  %v306_v57 = vld [vmem:[%s3561_s2 + $0x268] sm:$0xff]  ;;  %v300_v23 = vld [vmem:[%s3561_s2 + $0x238] sm:$0xff] }
 0x101   :  { %v2945_v62 = vpack.c.bf16 %v306_v57, %v298_v54  ;;  %v316_v54 = vld [vmem:[%s3561_s2 + $0x2b8] sm:$0xff] }
 0x102   :  { %1562 = vmatpush1.bf16.msra.mxu0 %v2857_v8  ;;  %1626 = vmatpush1.bf16.msra.mxu1 %v2859_v4  ;;  %3671 = vst [vmem:[#allocation37_spill] sm:$0xff] %v2905_v45  ;;  %v2907_v8 = vpack.c.bf16 %v292_v33, %v284_v31  ;;  %v308_v31 = vld [vmem:[%s3561_s2 + $0x278] sm:$0xff]  ;;  %v2929_v33 = vpop.f32.mrb[1].mxu1  ;;  %v297_v4 = vld [vmem:[%s3561_s2 + $0x220] sm:$0xff] }
 0x103   :  { %1564 = vmatprep.subr.bf16.mxu0 %v2867_v18  ;;  %1628 = vmatprep.subr.bf16.mxu1 %v2869_v63  ;;  %v2933_v63 = vpack.c.bf16 %v289_v39, %v281_v6  ;;  %v2935_v18 = vpack.c.bf16 %v291_v36, %v283_v22  ;;  %3675 = vst [vmem:[#allocation41_spill] sm:$0xff] %v2945_v62  ;;  %v299_v39 = vld [vmem:[%s3561_s2 + $0x230] sm:$0xff]  ;;  %v314_v22 = vld [vmem:[%s3561_s2 + $0x2a8] sm:$0xff]  ;;  %v324_v57 = vld [vmem:[%s3561_s2 + $0x2f8] sm:$0xff] }
 0x104   :  { %3672 = vst [vmem:[#allocation38_spill] sm:$0xff] %v2907_v8  ;;  %v307_v6 = vld [vmem:[%s3561_s2 + $0x270] sm:$0xff]  ;;  %v322_v36 = vld [vmem:[%s3561_s2 + $0x2e8] sm:$0xff] }
 0x105   :  { %3673 = vst [vmem:[#allocation39_spill] sm:$0xff] %v2933_v63  ;;  %3674 = vst [vmem:[#allocation40_spill] sm:$0xff] %v2935_v18 }
 0x106   :  { %1566 = vmatpush1.bf16.msra.mxu0 %v2893_v5  ;;  %1630 = vmatpush1.bf16.msra.mxu1 %v2895_v48  ;;  %v2947_v5 = vpack.c.bf16 %v308_v31, %v300_v23  ;;  %v2969_v23 = vpack.c.bf16 %v305_v25, %v297_v4  ;;  %v2971_v31 = vpack.c.bf16 %v307_v6, %v299_v39  ;;  %v315_v25 = vld [vmem:[%s3561_s2 + $0x2b0] sm:$0xff]  ;;  %v330_v39 = vld [vmem:[%s3561_s2 + $0x328] sm:$0xff] }
 0x107   :  { %1568 = vmatprep.subr.bf16.mxu0 %v2905_v45  ;;  %1632 = vmatprep.subr.bf16.mxu1 %v2907_v8  ;;  %v313_v8 = vld [vmem:[%s3561_s2 + $0x2a0] sm:$0xff]  ;;  %v2981_v48 = vpack.c.bf16 %v322_v36, %v314_v22  ;;  %v323_v4 = vld [vmem:[%s3561_s2 + $0x2f0] sm:$0xff]  ;;  %v338_v6 = vld [vmem:[%s3561_s2 + $0x368] sm:$0xff] }
 0x108   :  { %3676 = vst [vmem:[#allocation42_spill] sm:$0xff] %v2947_v5  ;;  %3677 = vst [vmem:[#allocation43_spill] sm:$0xff] %v2969_v23  ;;  %v321_v45 = vld [vmem:[%s3561_s2 + $0x2e0] sm:$0xff]  ;;  %v332_v22 = vld [vmem:[%s3561_s2 + $0x338] sm:$0xff] }
 0x109   :  { %3678 = vst [vmem:[#allocation44_spill] sm:$0xff] %v2971_v31  ;;  %3679 = vst [vmem:[#allocation45_spill] sm:$0xff] %v2981_v48  ;;  %v340_v36 = vld [vmem:[%s3561_s2 + $0x378] sm:$0xff] }
 0x10a   :  { %1570 = vmatpush1.bf16.msra.mxu0 %v2933_v63  ;;  %1634 = vmatpush1.bf16.msra.mxu1 %v2935_v18  ;;  %v2983_v63 = vpack.c.bf16 %v324_v57, %v316_v54  ;;  %v3005_v54 = vpack.c.bf16 %v321_v45, %v313_v8  ;;  %v3007_v57 = vpack.c.bf16 %v323_v4, %v315_v25  ;;  %v331_v45 = vld [vmem:[%s3561_s2 + $0x330] sm:$0xff]  ;;  %v346_v25 = vld [vmem:[%s3561_s2 + $0x3a8] sm:$0xff] }
 0x10b   :  { %1572 = vmatprep.subr.bf16.mxu0 %v2945_v62  ;;  %1636 = vmatprep.subr.bf16.mxu1 %v2947_v5  ;;  %v329_v5 = vld [vmem:[%s3561_s2 + $0x320] sm:$0xff]  ;;  %v3017_v18 = vpack.c.bf16 %v338_v6, %v330_v39  ;;  %v339_v8 = vld [vmem:[%s3561_s2 + $0x370] sm:$0xff]  ;;  %v354_v4 = vld [vmem:[%s3561_s2 + $0x3e8] sm:$0xff] }
 0x10c   :  { %3680 = vst [vmem:[#allocation46_spill] sm:$0xff] %v2983_v63  ;;  %3681 = vst [vmem:[#allocation47_spill] sm:$0xff] %v3005_v54  ;;  %v337_v62 = vld [vmem:[%s3561_s2 + $0x360] sm:$0xff]  ;;  %v348_v39 = vld [vmem:[%s3561_s2 + $0x3b8] sm:$0xff] }
 0x10d   :  { %3682 = vst [vmem:[#allocation48_spill] sm:$0xff] %v3007_v57  ;;  %3683 = vst [vmem:[#allocation49_spill] sm:$0xff] %v3017_v18  ;;  %v356_v6 = vld [vmem:[%s3561_s2 + $0x3f8] sm:$0xff] }
 0x10e   :  { %1574 = vmatpush1.bf16.msra.mxu0 %v2969_v23  ;;  %1638 = vmatpush1.bf16.msra.mxu1 %v2971_v31  ;;  %v3019_v23 = vpack.c.bf16 %v340_v36, %v332_v22  ;;  %v3041_v22 = vpack.c.bf16 %v337_v62, %v329_v5  ;;  %v3043_v36 = vpack.c.bf16 %v339_v8, %v331_v45  ;;  %v347_v62 = vld [vmem:[%s3561_s2 + $0x3b0] sm:$0xff]  ;;  %v362_v45 = vld [vmem:[%s3561_s2 + $0x428] sm:$0xff] }
 0x10f   :  { %1576 = vmatprep.subr.bf16.mxu0 %v2981_v48  ;;  %1640 = vmatprep.subr.bf16.mxu1 %v2983_v63  ;;  %v345_v63 = vld [vmem:[%s3561_s2 + $0x3a0] sm:$0xff]  ;;  %v3053_v31 = vpack.c.bf16 %v354_v4, %v346_v25  ;;  %v355_v5 = vld [vmem:[%s3561_s2 + $0x3f0] sm:$0xff]  ;;  %v370_v8 = vld [vmem:[%s3561_s2 + $0x468] sm:$0xff] }
 0x110   :  { %3684 = vst [vmem:[#allocation50_spill] sm:$0xff] %v3019_v23  ;;  %3685 = vst [vmem:[#allocation51_spill] sm:$0xff] %v3041_v22  ;;  %v353_v48 = vld [vmem:[%s3561_s2 + $0x3e0] sm:$0xff]  ;;  %v364_v25 = vld [vmem:[%s3561_s2 + $0x438] sm:$0xff] }
 0x111   :  { %3686 = vst [vmem:[#allocation52_spill] sm:$0xff] %v3043_v36  ;;  %3687 = vst [vmem:[#allocation53_spill] sm:$0xff] %v3053_v31  ;;  %v372_v4 = vld [vmem:[%s3561_s2 + $0x478] sm:$0xff] }
 0x112   :  { %1578 = vmatpush1.bf16.msra.mxu0 %v3005_v54  ;;  %1642 = vmatpush1.bf16.msra.mxu1 %v3007_v57  ;;  %v3055_v54 = vpack.c.bf16 %v356_v6, %v348_v39  ;;  %v3077_v39 = vpack.c.bf16 %v353_v48, %v345_v63  ;;  %v3079_v6 = vpack.c.bf16 %v355_v5, %v347_v62  ;;  %v363_v63 = vld [vmem:[%s3561_s2 + $0x430] sm:$0xff]  ;;  %v378_v62 = vld [vmem:[%s3561_s2 + $0x4a8] sm:$0xff] }
 0x113   :  { %1580 = vmatprep.subr.bf16.mxu0 %v3017_v18  ;;  %1644 = vmatprep.subr.bf16.mxu1 %v3019_v23  ;;  %v361_v23 = vld [vmem:[%s3561_s2 + $0x420] sm:$0xff]  ;;  %v3089_v57 = vpack.c.bf16 %v370_v8, %v362_v45  ;;  %v371_v48 = vld [vmem:[%s3561_s2 + $0x470] sm:$0xff]  ;;  %v386_v5 = vld [vmem:[%s3561_s2 + $0x4e8] sm:$0xff] }
 0x114   :  { %3688 = vst [vmem:[#allocation54_spill] sm:$0xff] %v3055_v54  ;;  %3689 = vst [vmem:[#allocation55_spill] sm:$0xff] %v3077_v39  ;;  %v369_v18 = vld [vmem:[%s3561_s2 + $0x460] sm:$0xff]  ;;  %v380_v45 = vld [vmem:[%s3561_s2 + $0x4b8] sm:$0xff] }
 0x115   :  { %3690 = vst [vmem:[#allocation56_spill] sm:$0xff] %v3079_v6  ;;  %3691 = vst [vmem:[#allocation57_spill] sm:$0xff] %v3089_v57  ;;  %v388_v8 = vld [vmem:[%s3561_s2 + $0x4f8] sm:$0xff] }
 0x116   :  { %1582 = vmatpush1.bf16.msra.mxu0 %v3041_v22  ;;  %1646 = vmatpush1.bf16.msra.mxu1 %v3043_v36  ;;  %v3091_v22 = vpack.c.bf16 %v372_v4, %v364_v25  ;;  %v3113_v25 = vpack.c.bf16 %v369_v18, %v361_v23  ;;  %v3115_v4 = vpack.c.bf16 %v371_v48, %v363_v63  ;;  %v379_v18 = vld [vmem:[%s3561_s2 + $0x4b0] sm:$0xff]  ;;  %v394_v63 = vld [vmem:[%s3561_s2 + $0x528] sm:$0xff] }
 0x117   :  { %1584 = vmatprep.subr.bf16.mxu0 %v3053_v31  ;;  %1648 = vmatprep.subr.bf16.mxu1 %v3055_v54  ;;  %v377_v54 = vld [vmem:[%s3561_s2 + $0x4a0] sm:$0xff]  ;;  %v3125_v36 = vpack.c.bf16 %v386_v5, %v378_v62  ;;  %v387_v23 = vld [vmem:[%s3561_s2 + $0x4f0] sm:$0xff]  ;;  %v402_v48 = vld [vmem:[%s3561_s2 + $0x568] sm:$0xff] }
 0x118   :  { %3692 = vst [vmem:[#allocation58_spill] sm:$0xff] %v3091_v22  ;;  %3693 = vst [vmem:[#allocation59_spill] sm:$0xff] %v3113_v25  ;;  %v385_v31 = vld [vmem:[%s3561_s2 + $0x4e0] sm:$0xff]  ;;  %v396_v62 = vld [vmem:[%s3561_s2 + $0x538] sm:$0xff] }
 0x119   :  { %3694 = vst [vmem:[#allocation60_spill] sm:$0xff] %v3115_v4  ;;  %3695 = vst [vmem:[#allocation61_spill] sm:$0xff] %v3125_v36  ;;  %v404_v5 = vld [vmem:[%s3561_s2 + $0x578] sm:$0xff] }
 0x11a   :  { %1586 = vmatpush1.bf16.msra.mxu0 %v3077_v39  ;;  %1650 = vmatpush1.bf16.msra.mxu1 %v3079_v6  ;;  %v3127_v39 = vpack.c.bf16 %v388_v8, %v380_v45  ;;  %v3149_v45 = vpack.c.bf16 %v385_v31, %v377_v54  ;;  %v3151_v8 = vpack.c.bf16 %v387_v23, %v379_v18  ;;  %v395_v31 = vld [vmem:[%s3561_s2 + $0x530] sm:$0xff]  ;;  %v410_v18 = vld [vmem:[%s3561_s2 + $0x5a8] sm:$0xff] }
 0x11b   :  { %1588 = vmatprep.subr.bf16.mxu0 %v3089_v57  ;;  %1652 = vmatprep.subr.bf16.mxu1 %v3091_v22  ;;  %v393_v22 = vld [vmem:[%s3561_s2 + $0x520] sm:$0xff]  ;;  %v3161_v6 = vpack.c.bf16 %v402_v48, %v394_v63  ;;  %v403_v54 = vld [vmem:[%s3561_s2 + $0x570] sm:$0xff]  ;;  %v418_v23 = vld [vmem:[%s3561_s2 + $0x5e8] sm:$0xff] }
 0x11c   :  { %3696 = vst [vmem:[#allocation62_spill] sm:$0xff] %v3127_v39  ;;  %3697 = vst [vmem:[#allocation63_spill] sm:$0xff] %v3149_v45  ;;  %v401_v57 = vld [vmem:[%s3561_s2 + $0x560] sm:$0xff]  ;;  %v412_v63 = vld [vmem:[%s3561_s2 + $0x5b8] sm:$0xff] }
 0x11d   :  { %3698 = vst [vmem:[#allocation64_spill] sm:$0xff] %v3151_v8  ;;  %3699 = vst [vmem:[#allocation65_spill] sm:$0xff] %v3161_v6  ;;  %v420_v48 = vld [vmem:[%s3561_s2 + $0x5f8] sm:$0xff] }
 0x11e   :  { %1590 = vmatpush1.bf16.msra.mxu0 %v3113_v25  ;;  %1654 = vmatpush1.bf16.msra.mxu1 %v3115_v4  ;;  %v3163_v25 = vpack.c.bf16 %v404_v5, %v396_v62  ;;  %v3185_v62 = vpack.c.bf16 %v401_v57, %v393_v22  ;;  %v3187_v5 = vpack.c.bf16 %v403_v54, %v395_v31  ;;  %v411_v57 = vld [vmem:[%s3561_s2 + $0x5b0] sm:$0xff]  ;;  %v426_v31 = vld [vmem:[%s3561_s2 + $0x628] sm:$0xff] }
 0x11f   :  { %1592 = vmatprep.subr.bf16.mxu0 %v3125_v36  ;;  %1656 = vmatprep.subr.bf16.mxu1 %v3127_v39  ;;  %v409_v39 = vld [vmem:[%s3561_s2 + $0x5a0] sm:$0xff]  ;;  %v3197_v4 = vpack.c.bf16 %v418_v23, %v410_v18  ;;  %v419_v22 = vld [vmem:[%s3561_s2 + $0x5f0] sm:$0xff]  ;;  %v434_v54 = vld [vmem:[%s3561_s2 + $0x668] sm:$0xff] }
 0x120   :  { %3700 = vst [vmem:[#allocation66_spill] sm:$0xff] %v3163_v25  ;;  %3701 = vst [vmem:[#allocation67_spill] sm:$0xff] %v3185_v62  ;;  %v417_v36 = vld [vmem:[%s3561_s2 + $0x5e0] sm:$0xff]  ;;  %v428_v18 = vld [vmem:[%s3561_s2 + $0x638] sm:$0xff] }
 0x121   :  { %3702 = vst [vmem:[#allocation68_spill] sm:$0xff] %v3187_v5  ;;  %3703 = vst [vmem:[#allocation69_spill] sm:$0xff] %v3197_v4  ;;  %v436_v23 = vld [vmem:[%s3561_s2 + $0x678] sm:$0xff] }
 0x122   :  { %1594 = vmatpush1.bf16.msra.mxu0 %v3149_v45  ;;  %1658 = vmatpush1.bf16.msra.mxu1 %v3151_v8  ;;  %v3199_v45 = vpack.c.bf16 %v420_v48, %v412_v63  ;;  %v3221_v63 = vpack.c.bf16 %v417_v36, %v409_v39  ;;  %v3223_v48 = vpack.c.bf16 %v419_v22, %v411_v57  ;;  %v427_v36 = vld [vmem:[%s3561_s2 + $0x630] sm:$0xff]  ;;  %v442_v57 = vld [vmem:[%s3561_s2 + $0x6a8] sm:$0xff] }
 0x123   :  { %1596 = vmatprep.subr.bf16.mxu0 %v3161_v6  ;;  %1660 = vmatprep.subr.bf16.mxu1 %v3163_v25  ;;  %v425_v25 = vld [vmem:[%s3561_s2 + $0x620] sm:$0xff]  ;;  %v3233_v8 = vpack.c.bf16 %v434_v54, %v426_v31  ;;  %v435_v39 = vld [vmem:[%s3561_s2 + $0x670] sm:$0xff]  ;;  %v450_v22 = vld [vmem:[%s3561_s2 + $0x6e8] sm:$0xff] }
 0x124   :  { %3704 = vst [vmem:[#allocation70_spill] sm:$0xff] %v3199_v45  ;;  %3705 = vst [vmem:[#allocation71_spill] sm:$0xff] %v3221_v63  ;;  %v433_v6 = vld [vmem:[%s3561_s2 + $0x660] sm:$0xff]  ;;  %v444_v31 = vld [vmem:[%s3561_s2 + $0x6b8] sm:$0xff] }
 0x125   :  { %3706 = vst [vmem:[#allocation72_spill] sm:$0xff] %v3223_v48  ;;  %3707 = vst [vmem:[#allocation73_spill] sm:$0xff] %v3233_v8  ;;  %v452_v54 = vld [vmem:[%s3561_s2 + $0x6f8] sm:$0xff] }
 0x126   :  { %1598 = vmatpush1.bf16.msra.mxu0 %v3185_v62  ;;  %1662 = vmatpush1.bf16.msra.mxu1 %v3187_v5  ;;  %v3235_v62 = vpack.c.bf16 %v436_v23, %v428_v18  ;;  %v3257_v18 = vpack.c.bf16 %v433_v6, %v425_v25  ;;  %v3259_v23 = vpack.c.bf16 %v435_v39, %v427_v36  ;;  %v443_v6 = vld [vmem:[%s3561_s2 + $0x6b0] sm:$0xff]  ;;  %v458_v36 = vld [vmem:[%s3561_s2 + $0x728] sm:$0xff] }
 0x127   :  { %1600 = vmatprep.subr.bf16.mxu0 %v3197_v4  ;;  %1664 = vmatprep.subr.bf16.mxu1 %v3199_v45  ;;  %v441_v45 = vld [vmem:[%s3561_s2 + $0x6a0] sm:$0xff]  ;;  %v3269_v5 = vpack.c.bf16 %v450_v22, %v442_v57  ;;  %v451_v25 = vld [vmem:[%s3561_s2 + $0x6f0] sm:$0xff]  ;;  %v466_v39 = vld [vmem:[%s3561_s2 + $0x768] sm:$0xff] }
 0x128   :  { %3708 = vst [vmem:[#allocation74_spill] sm:$0xff] %v3235_v62  ;;  %3709 = vst [vmem:[#allocation75_spill] sm:$0xff] %v3257_v18  ;;  %v449_v4 = vld [vmem:[%s3561_s2 + $0x6e0] sm:$0xff]  ;;  %v460_v57 = vld [vmem:[%s3561_s2 + $0x738] sm:$0xff] }
 0x129   :  { %3710 = vst [vmem:[#allocation76_spill] sm:$0xff] %v3259_v23  ;;  %3711 = vst [vmem:[#allocation77_spill] sm:$0xff] %v3269_v5  ;;  %v468_v22 = vld [vmem:[%s3561_s2 + $0x778] sm:$0xff] }
 0x12a   :  { %1602 = vmatpush1.bf16.msra.mxu0 %v3221_v63  ;;  %1666 = vmatpush1.bf16.msra.mxu1 %v3223_v48  ;;  %v3271_v63 = vpack.c.bf16 %v452_v54, %v444_v31  ;;  %v3293_v31 = vpack.c.bf16 %v449_v4, %v441_v45  ;;  %v3295_v54 = vpack.c.bf16 %v451_v25, %v443_v6  ;;  %v459_v4 = vld [vmem:[%s3561_s2 + $0x730] sm:$0xff]  ;;  %v474_v6 = vld [vmem:[%s3561_s2 + $0x7a8] sm:$0xff] }
 0x12b   :  { %1604 = vmatprep.subr.bf16.mxu0 %v3233_v8  ;;  %1668 = vmatprep.subr.bf16.mxu1 %v3235_v62  ;;  %v457_v62 = vld [vmem:[%s3561_s2 + $0x720] sm:$0xff]  ;;  %v3305_v48 = vpack.c.bf16 %v466_v39, %v458_v36  ;;  %v467_v45 = vld [vmem:[%s3561_s2 + $0x770] sm:$0xff]  ;;  %v482_v25 = vld [vmem:[%s3561_s2 + $0x7e8] sm:$0xff] }
 0x12c   :  { %3712 = vst [vmem:[#allocation78_spill] sm:$0xff] %v3271_v63  ;;  %3713 = vst [vmem:[#allocation79_spill] sm:$0xff] %v3295_v54  ;;  %v465_v8 = vld [vmem:[%s3561_s2 + $0x760] sm:$0xff]  ;;  %v476_v36 = vld [vmem:[%s3561_s2 + $0x7b8] sm:$0xff] }
 0x12d   :  { %v484_v39 = vld [vmem:[%s3561_s2 + $0x7f8] sm:$0xff] }
 0x12e   :  { %1606 = vmatpush1.bf16.msra.mxu0 %v3257_v18  ;;  %1670 = vmatpush1.bf16.msra.mxu1 %v3259_v23  ;;  %v3307_v18 = vpack.c.bf16 %v468_v22, %v460_v57  ;;  %v3329_v57 = vpack.c.bf16 %v465_v8, %v457_v62  ;;  %v3331_v22 = vpack.c.bf16 %v467_v45, %v459_v4  ;;  %v475_v8 = vld [vmem:[%s3561_s2 + $0x7b0] sm:$0xff] }
 0x12f   :  { %1608 = vmatprep.subr.bf16.mxu0 %v3269_v5  ;;  %1672 = vmatprep.subr.bf16.mxu1 %v3271_v63  ;;  %v473_v63 = vld [vmem:[%s3561_s2 + $0x7a0] sm:$0xff]  ;;  %v3338_v5 = vpack.c.bf16 %v482_v25, %v474_v6  ;;  %v3340_v23 = vpack.c.bf16 %v484_v39, %v476_v36  ;;  %v483_v62 = vld [vmem:[%s3561_s2 + $0x7f0] sm:$0xff]  ;;  %v3364_v6 = vmax.f32 %v2929_v33, 0.0 }
 0x130   :  { %v3355_v45 = vpack.c.bf16 %v483_v62, %v475_v8  ;;  %v3759_v33 = vld [vmem:[#allocation50_spill] sm:$0xff]  ;;  %v3762_v25 = vld [vmem:[#allocation53_spill] sm:$0xff]  ;;  %v3764_v39 = vld [vmem:[#allocation55_spill] sm:$0xff] }
 0x131   :  { %v3763_v36 = vld [vmem:[#allocation54_spill] sm:$0xff]  ;;  %v3765_v8 = vld [vmem:[#allocation56_spill] sm:$0xff]  ;;  %v3766_v62 = vld [vmem:[#allocation57_spill] sm:$0xff] }
 0x132   :  { %1610 = vmatpush1.bf16.msra.mxu0 %v3293_v31  ;;  %1674 = vmatpush1.bf16.msra.mxu1 %v3295_v54  ;;  %v481_v54 = vld [vmem:[%s3561_s2 + $0x7e0] sm:$0xff] }
 0x133   :  { %1612 = vmatprep.subr.bf16.mxu0 %v3305_v48  ;;  %1676 = vmatprep.subr.bf16.mxu1 %v3307_v18  ;;  %v3353_v4 = vpack.c.bf16 %v481_v54, %v473_v63  ;;  %v3760_v63 = vld [vmem:[#allocation51_spill] sm:$0xff]  ;;  %v3761_v54 = vld [vmem:[#allocation52_spill] sm:$0xff] }
 0x136   :  { %1614 = vmatpush1.bf16.msra.mxu0 %v3329_v57  ;;  %1678 = vmatpush1.bf16.msra.mxu1 %v3331_v22 }
 0x137   :  { %1616 = vmatprep.subr.bf16.mxu0 %v3338_v5  ;;  %1680 = vmatprep.subr.bf16.mxu1 %v3340_v23 }
 0x13a   :  { %1618 = vmatpush1.bf16.msra.mxu0 %v3353_v4  ;;  %1682 = vmatpush1.bf16.msra.mxu1 %v3355_v45 }
 0x13b   :  { %1684 = vmatprep.subr.bf16.mxu0 %v2182_v24  ;;  %1748 = vmatprep.subr.bf16.mxu1 %v2261_v55  ;;  %v3714_v24 = vld [vmem:[#allocation5_spill] sm:$0xff]  ;;  %v3719_v55 = vld [vmem:[#allocation14_spill] sm:$0xff] }
 0x13d   :  { %693 = vmatmul.mubr.f32.vlgmr.msra.gmra.mrb[4].mxu0 %v2829_v26  ;;  %764 = vmatmul.mubr.f32.vlgmr.msra.gmra.mrb[4].mxu1 %v2829_v26  ;;  %v3754_v26 = vld [vmem:[#allocation45_spill] sm:$0xff] }
 0x13e   :  { %1686 = vmatpush1.bf16.msra.mxu0 %v2210_v35  ;;  %1750 = vmatpush1.bf16.msra.mxu1 %v2293_v2  ;;  %v3715_v35 = vld [vmem:[#allocation10_spill] sm:$0xff]  ;;  %v3722_v2 = vld [vmem:[#allocation9_spill] sm:$0xff] }
 0x13f   :  { %1688 = vmatprep.subr.bf16.mxu0 %v2216_v37  ;;  %1752 = vmatprep.subr.bf16.mxu1 %v2296_v3  ;;  %v3716_v37 = vld [vmem:[#allocation6_spill] sm:$0xff]  ;;  %v3723_v3 = vld [vmem:[#allocation17_spill] sm:$0xff] }
 0x140   :  { %978 = vmatprep.mubr.f32.mxu0 %v3364_v6  ;;  %1049 = vmatprep.mubr.f32.mxu1 %v3364_v6 }
 0x142   :  { %1690 = vmatpush1.bf16.msra.mxu0 %v2241_v47  ;;  %1754 = vmatpush1.bf16.msra.mxu1 %v2330_v14  ;;  %v3717_v47 = vld [vmem:[#allocation13_spill] sm:$0xff]  ;;  %v3726_v14 = vld [vmem:[#allocation12_spill] sm:$0xff] }
 0x143   :  { %1692 = vmatprep.subr.bf16.mxu0 %v2247_v49  ;;  %1756 = vmatprep.subr.bf16.mxu1 %v2333_v15  ;;  %v3718_v49 = vld [vmem:[#allocation7_spill] sm:$0xff] }
 0x144   :  { %v3727_v15 = vld [vmem:[#allocation19_spill] sm:$0xff] }
 0x146   :  { %1694 = vmatpush1.bf16.msra.mxu0 %v2273_v59  ;;  %1758 = vmatpush1.bf16.msra.mxu1 %v2366_v27  ;;  %v3720_v59 = vld [vmem:[#allocation8_spill] sm:$0xff]  ;;  %v3730_v27 = vld [vmem:[#allocation21_spill] sm:$0xff] }
 0x147   :  { %1696 = vmatprep.subr.bf16.mxu0 %v2279_v61  ;;  %1760 = vmatprep.subr.bf16.mxu1 %v2369_v28  ;;  %v3721_v61 = vld [vmem:[#allocation16_spill] sm:$0xff]  ;;  %v3731_v28 = vld [vmem:[#allocation22_spill] sm:$0xff] }
 0x14a   :  { %1698 = vmatpush1.bf16.msra.mxu0 %v2308_v7  ;;  %1762 = vmatpush1.bf16.msra.mxu1 %v2402_v41  ;;  %v3724_v7 = vld [vmem:[#allocation11_spill] sm:$0xff]  ;;  %v3733_v41 = vld [vmem:[#allocation24_spill] sm:$0xff] }
 0x14b   :  { %1700 = vmatprep.subr.bf16.mxu0 %v2314_v9  ;;  %1764 = vmatprep.subr.bf16.mxu1 %v2405_v42  ;;  %v3725_v9 = vld [vmem:[#allocation18_spill] sm:$0xff]  ;;  %v3734_v42 = vld [vmem:[#allocation25_spill] sm:$0xff] }
 0x14e   :  { %1702 = vmatpush1.bf16.msra.mxu0 %v2345_v19  ;;  %1766 = vmatpush1.bf16.msra.mxu1 %v2438_v56  ;;  %v3728_v19 = vld [vmem:[#allocation15_spill] sm:$0xff]  ;;  %v3737_v56 = vld [vmem:[#allocation28_spill] sm:$0xff] }
 0x14f   :  { %1704 = vmatprep.subr.bf16.mxu0 %v2351_v21  ;;  %1768 = vmatprep.subr.bf16.mxu1 %v2444_v58  ;;  %v3729_v21 = vld [vmem:[#allocation20_spill] sm:$0xff]  ;;  %v3738_v58 = vld [vmem:[#allocation29_spill] sm:$0xff] }
 0x152   :  { %1706 = vmatpush1.bf16.msra.mxu0 %v2381_v32  ;;  %1770 = vmatpush1.bf16.msra.mxu1 %v2474_v10  ;;  %v3431_v32 = vmax.f32 %v2918_v53, 0.0  ;;  %v3741_v10 = vld [vmem:[#allocation32_spill] sm:$0xff]  ;;  %v3758_v53 = vld [vmem:[#allocation49_spill] sm:$0xff] }
 0x153   :  { %1708 = vmatprep.subr.bf16.mxu0 %v2387_v34  ;;  %1772 = vmatprep.subr.bf16.mxu1 %v2477_v11  ;;  %v3732_v34 = vld [vmem:[#allocation23_spill] sm:$0xff]  ;;  %v3742_v11 = vld [vmem:[#allocation33_spill] sm:$0xff] }
 0x156   :  { %1710 = vmatpush1.bf16.msra.mxu0 %v2417_v46  ;;  %1774 = vmatpush1.bf16.msra.mxu1 %v2510_v29  ;;  %v3735_v46 = vld [vmem:[#allocation26_spill] sm:$0xff]  ;;  %v3745_v29 = vld [vmem:[#allocation36_spill] sm:$0xff] }
 0x157   :  { %1712 = vmatprep.subr.bf16.mxu0 %v2423_v50  ;;  %1776 = vmatprep.subr.bf16.mxu1 %v2513_v30  ;;  %v3736_v50 = vld [vmem:[#allocation27_spill] sm:$0xff]  ;;  %v3746_v30 = vld [vmem:[#allocation37_spill] sm:$0xff] }
 0x15a   :  { %1714 = vmatpush1.bf16.msra.mxu0 %v2456_v0  ;;  %1778 = vmatpush1.bf16.msra.mxu1 %v2546_v51  ;;  %v3739_v0 = vld [vmem:[#allocation30_spill] sm:$0xff]  ;;  %v3749_v51 = vld [vmem:[#allocation40_spill] sm:$0xff] }
 0x15b   :  { %1716 = vmatprep.subr.bf16.mxu0 %v2459_v1  ;;  %1780 = vmatprep.subr.bf16.mxu1 %v2549_v52  ;;  %v3740_v1 = vld [vmem:[#allocation31_spill] sm:$0xff]  ;;  %v3750_v52 = vld [vmem:[#allocation41_spill] sm:$0xff] }
 0x15e   :  { %1718 = vmatpush1.bf16.msra.mxu0 %v2489_v17  ;;  %1782 = vmatpush1.bf16.msra.mxu1 %v2582_v12  ;;  %v3743_v17 = vld [vmem:[#allocation34_spill] sm:$0xff]  ;;  %v3752_v12 = vld [vmem:[#allocation43_spill] sm:$0xff] }
 0x15f   :  { %1720 = vmatprep.subr.bf16.mxu0 %v2495_v20  ;;  %1784 = vmatprep.subr.bf16.mxu1 %v2585_v13  ;;  %v3744_v20 = vld [vmem:[#allocation35_spill] sm:$0xff]  ;;  %v3753_v13 = vld [vmem:[#allocation44_spill] sm:$0xff] }
 0x162   :  { %1722 = vmatpush1.bf16.msra.mxu0 %v2525_v38  ;;  %1786 = vmatpush1.bf16.msra.mxu1 %v2618_v43  ;;  %v3747_v38 = vld [vmem:[#allocation38_spill] sm:$0xff] }
 0x163   :  { %1724 = vmatprep.subr.bf16.mxu0 %v2531_v40  ;;  %1788 = vmatprep.subr.bf16.mxu1 %v2621_v44  ;;  %v3748_v40 = vld [vmem:[#allocation39_spill] sm:$0xff]  ;;  %v3755_v43 = vld [vmem:[#allocation46_spill] sm:$0xff] }
 0x164   :  { %v3756_v44 = vld [vmem:[#allocation47_spill] sm:$0xff] }
 0x166   :  { %1726 = vmatpush1.bf16.msra.mxu0 %v2561_v60  ;;  %1790 = vmatpush1.bf16.msra.mxu1 %v2654_v16  ;;  %v3751_v60 = vld [vmem:[#allocation42_spill] sm:$0xff]  ;;  %v3757_v16 = vld [vmem:[#allocation48_spill] sm:$0xff] }
 0x167   :  { %1728 = vmatprep.subr.bf16.mxu0 %v3714_v24  ;;  %1792 = vmatprep.subr.bf16.mxu1 %v3715_v35  ;;  %v3768_v24 = vld [vmem:[#allocation59_spill] sm:$0xff]  ;;  %v3769_v35 = vld [vmem:[#allocation60_spill] sm:$0xff] }
 0x16a   :  { %1730 = vmatpush1.bf16.msra.mxu0 %v3716_v37  ;;  %1794 = vmatpush1.bf16.msra.mxu1 %v3717_v47  ;;  %v3770_v37 = vld [vmem:[#allocation61_spill] sm:$0xff]  ;;  %v3771_v47 = vld [vmem:[#allocation62_spill] sm:$0xff] }
 0x16b   :  { %1732 = vmatprep.subr.bf16.mxu0 %v3718_v49  ;;  %1796 = vmatprep.subr.bf16.mxu1 %v3719_v55  ;;  %v3772_v49 = vld [vmem:[#allocation63_spill] sm:$0xff]  ;;  %v3773_v55 = vld [vmem:[#allocation64_spill] sm:$0xff] }
 0x16e   :  { %1734 = vmatpush1.bf16.msra.mxu0 %v3720_v59  ;;  %1798 = vmatpush1.bf16.msra.mxu1 %v3721_v61  ;;  %v3774_v59 = vld [vmem:[#allocation65_spill] sm:$0xff]  ;;  %v3775_v61 = vld [vmem:[#allocation66_spill] sm:$0xff] }
 0x16f   :  { %1736 = vmatprep.subr.bf16.mxu0 %v3722_v2  ;;  %1800 = vmatprep.subr.bf16.mxu1 %v3723_v3  ;;  %v3776_v2 = vld [vmem:[#allocation67_spill] sm:$0xff]  ;;  %v3777_v3 = vld [vmem:[#allocation68_spill] sm:$0xff] }
 0x172   :  { %1738 = vmatpush1.bf16.msra.mxu0 %v3724_v7  ;;  %1802 = vmatpush1.bf16.msra.mxu1 %v3725_v9  ;;  %v3778_v7 = vld [vmem:[#allocation69_spill] sm:$0xff]  ;;  %v3779_v9 = vld [vmem:[#allocation70_spill] sm:$0xff] }
 0x173   :  { %1740 = vmatprep.subr.bf16.mxu0 %v3726_v14  ;;  %1804 = vmatprep.subr.bf16.mxu1 %v3727_v15  ;;  %v3780_v14 = vld [vmem:[#allocation71_spill] sm:$0xff]  ;;  %v3781_v15 = vld [vmem:[#allocation72_spill] sm:$0xff] }
 0x176   :  { %1742 = vmatpush1.bf16.msra.mxu0 %v3728_v19  ;;  %1806 = vmatpush1.bf16.msra.mxu1 %v3729_v21  ;;  %v3782_v19 = vld [vmem:[#allocation73_spill] sm:$0xff]  ;;  %v3783_v21 = vld [vmem:[#allocation74_spill] sm:$0xff] }
 0x177   :  { %1744 = vmatprep.subr.bf16.mxu0 %v3730_v27  ;;  %1808 = vmatprep.subr.bf16.mxu1 %v3731_v28  ;;  %v3784_v27 = vld [vmem:[#allocation75_spill] sm:$0xff]  ;;  %v3785_v28 = vld [vmem:[#allocation76_spill] sm:$0xff] }
 0x17a   :  { %1746 = vmatpush1.bf16.msra.mxu0 %v3732_v34  ;;  %1810 = vmatpush1.bf16.msra.mxu1 %v3733_v41  ;;  %v3786_v34 = vld [vmem:[#allocation77_spill] sm:$0xff]  ;;  %v3787_v41 = vld [vmem:[#allocation78_spill] sm:$0xff] }
 0x17b   :  { %1812 = vmatprep.subr.bf16.mxu0 %v3734_v42  ;;  %1876 = vmatprep.subr.bf16.mxu1 %v3735_v46  ;;  %v3788_v42 = vld [vmem:[#allocation79_spill] sm:$0xff]  ;;  %v775_v46 = vlaneseq }
 0x17d   :  { %979 = vmatmul.mubr.f32.vlgmr.msra.gmra.mrb[6].mxu0 %v3431_v32  ;;  %1050 = vmatmul.mubr.f32.vlgmr.msra.gmra.mrb[6].mxu1 %v3431_v32 }
 0x17e   :  { %1814 = vmatpush1.bf16.msra.mxu0 %v3736_v50  ;;  %1120 = vmatprep.mubr.f32.mxu0 %v3364_v6  ;;  %v3505_v50 = vshrl.u32 %v775_v46, 7 }
 0x17f   :  { %1878 = vmatpush1.bf16.msra.mxu1 %v3737_v56  ;;  %1191 = vmatprep.mubr.f32.mxu1 %v3364_v6  ;;  %v3767_v6 = vld [vmem:[#allocation58_spill] sm:$0xff] }
 0x180   :  { %1816 = vmatprep.subr.bf16.mxu0 %v3738_v58  ;;  %1880 = vmatprep.subr.bf16.mxu1 %v3739_v0 }
 0x182   :  { %1818 = vmatpush1.bf16.msra.mxu0 %v3740_v1 }
 0x183   :  { %1882 = vmatpush1.bf16.msra.mxu1 %v3741_v10  ;;  %1820 = vmatprep.subr.bf16.mxu0 %v3742_v11 }
 0x184   :  { %1884 = vmatprep.subr.bf16.mxu1 %v3743_v17 }
 0x186   :  { %1822 = vmatpush1.bf16.msra.mxu0 %v3744_v20 }
 0x187   :  { %1886 = vmatpush1.bf16.msra.mxu1 %v3745_v29  ;;  %1824 = vmatprep.subr.bf16.mxu0 %v3746_v30 }
 0x188   :  { %1888 = vmatprep.subr.bf16.mxu1 %v3747_v38 }
 0x18a   :  { %1826 = vmatpush1.bf16.msra.mxu0 %v3748_v40 }
 0x18b   :  { %1890 = vmatpush1.bf16.msra.mxu1 %v3749_v51  ;;  %1828 = vmatprep.subr.bf16.mxu0 %v3750_v52 }
 0x18c   :  { %1892 = vmatprep.subr.bf16.mxu1 %v3751_v60 }
 0x18e   :  { %1830 = vmatpush1.bf16.msra.mxu0 %v3752_v12 }
 0x18f   :  { %1894 = vmatpush1.bf16.msra.mxu1 %v3753_v13  ;;  %1832 = vmatprep.subr.bf16.mxu0 %v3754_v26 }
 0x190   :  { %1896 = vmatprep.subr.bf16.mxu1 %v3755_v43 }
 0x192   :  { %1834 = vmatpush1.bf16.msra.mxu0 %v3756_v44 }
 0x193   :  { %1898 = vmatpush1.bf16.msra.mxu1 %v3757_v16  ;;  %1836 = vmatprep.subr.bf16.mxu0 %v3758_v53 }
 0x194   :  { %1900 = vmatprep.subr.bf16.mxu1 %v3759_v33 }
 0x196   :  { %1838 = vmatpush1.bf16.msra.mxu0 %v3760_v63 }
 0x197   :  { %1902 = vmatpush1.bf16.msra.mxu1 %v3761_v54  ;;  %1840 = vmatprep.subr.bf16.mxu0 %v3762_v25 }
 0x198   :  { %1904 = vmatprep.subr.bf16.mxu1 %v3763_v36 }
 0x19a   :  { %1842 = vmatpush1.bf16.msra.mxu0 %v3764_v39 }
 0x19b   :  { %1906 = vmatpush1.bf16.msra.mxu1 %v3765_v8  ;;  %1844 = vmatprep.subr.bf16.mxu0 %v3766_v62 }
 0x19c   :  { %1908 = vmatprep.subr.bf16.mxu1 %v3767_v6 }
 0x19e   :  { %1846 = vmatpush1.bf16.msra.mxu0 %v3768_v24 }
 0x19f   :  { %1910 = vmatpush1.bf16.msra.mxu1 %v3769_v35  ;;  %1848 = vmatprep.subr.bf16.mxu0 %v3770_v37 }
 0x1a0   :  { %1912 = vmatprep.subr.bf16.mxu1 %v3771_v47 }
 0x1a2   :  { %1850 = vmatpush1.bf16.msra.mxu0 %v3772_v49 }
 0x1a3   :  { %1914 = vmatpush1.bf16.msra.mxu1 %v3773_v55  ;;  %1852 = vmatprep.subr.bf16.mxu0 %v3774_v59 }
 0x1a4   :  { %1916 = vmatprep.subr.bf16.mxu1 %v3775_v61 }
 0x1a6   :  { %1854 = vmatpush1.bf16.msra.mxu0 %v3776_v2 }
 0x1a7   :  { %1918 = vmatpush1.bf16.msra.mxu1 %v3777_v3  ;;  %1856 = vmatprep.subr.bf16.mxu0 %v3778_v7 }
 0x1a8   :  { %1920 = vmatprep.subr.bf16.mxu1 %v3779_v9 }
 0x1aa   :  { %1858 = vmatpush1.bf16.msra.mxu0 %v3780_v14 }
 0x1ab   :  { %1922 = vmatpush1.bf16.msra.mxu1 %v3781_v15  ;;  %1860 = vmatprep.subr.bf16.mxu0 %v3782_v19 }
 0x1ac   :  { %1924 = vmatprep.subr.bf16.mxu1 %v3783_v21 }
 0x1ae   :  { %1862 = vmatpush1.bf16.msra.mxu0 %v3784_v27 }
 0x1af   :  { %1926 = vmatpush1.bf16.msra.mxu1 %v3785_v28  ;;  %1864 = vmatprep.subr.bf16.mxu0 %v3786_v34 }
 0x1b0   :  { %1928 = vmatprep.subr.bf16.mxu1 %v3787_v41 }
 0x1b2   :  { %1866 = vmatpush1.bf16.msra.mxu0 %v3293_v31  ;;  %v1975_v31 = vmov 1966171168  }
 0x1b3   :  { %1930 = vmatpush1.bf16.msra.mxu1 %v3788_v42  ;;  %1868 = vmatprep.subr.bf16.mxu0 %v3305_v48  ;;  %v773_v48 = vunpack.c.l.s4 %v1975_v31 }
 0x1b4   :  { %1932 = vmatprep.subr.bf16.mxu1 %v3307_v18 }
 0x1b5   :  { %v774_v18 = vunpack.c.0.s8 %v773_v48 }
 0x1b6   :  { %1870 = vmatpush1.bf16.msra.mxu0 %v3329_v57 }
 0x1b7   :  { %1934 = vmatpush1.bf16.msra.mxu1 %v3331_v22  ;;  %1872 = vmatprep.subr.bf16.mxu0 %v3338_v5  ;;  %v3508_v57 = vsub.s32 %v774_v18, %v3505_v50 }
 0x1b8   :  { %1936 = vmatprep.subr.bf16.mxu1 %v3340_v23 }
 0x1ba   :  { %1874 = vmatpush1.bf16.msra.mxu0 %v3353_v4 }
 0x1bb   :  { %1938 = vmatpush1.bf16.msra.mxu1 %v3355_v45 }
 0x1bd   :  { %1121 = vmatmul.mubr.f32.vlgmr.msra.gmra.mrb[8].mxu0 %v3431_v32 }
 0x1be   :  { %1192 = vmatmul.mubr.f32.vlgmr.msra.gmra.mrb[8].mxu1 %v3431_v32  ;;  %v485_v32 = vld [vmem:[%s3562_s3] sm:$0x1]  ;;  %s1976_s3 = smov [#allocation2]  }
 0x1bf   :  { %s1355_s23 = sshll.u32 %s1976_s3, 4  ;;  %s1356_s23 = int_to_ptr.vmem [resolvable:$true] %s1355_s23 }
 0x1c0   :  { %s1950_s24 = scalar_lea.vmem %s1356_s23, 32  ;;  %p1955_p1 = scmp.lt.s32.totalorder %s1356_s23, %s1356_s23 }
 0x1c1   :  { %p1951_p0 = scmp.ne.s32.totalorder %s1356_s23, %s1950_s24  ;;  %p1956_p2 = scmp.lt.s32.totalorder %s1950_s24, %s1950_s24 }
 0x1c3   :  { %p1957_p3 = por %p1956_p2, %p1955_p1 }
 0x1c5   :  { %p1958_p4 = pnand %p1957_p3, %p1951_p0 }
 0x1d0   :  { %v552_v5 = vpop.f32.mrb[2].mxu0  ;;  %v623_v22 = vpop.f32.mrb[2].mxu1 }
 0x1d1   :  { %v796_v23 = vrot.slane %v623_v22, %v3508_v57  ;;  %v554_v4 = vpop.f32.mrb[3].mxu0  ;;  %v625_v56 = vpop.f32.mrb[3].mxu1  ;;  %v770_v11 = vadd.f32 %v552_v5, %v485_v32 }
 0x1d2   :  { %v778_v45 = vrot.slane %v554_v4, %v3508_v57  ;;  %v814_v58 = vrot.slane %v625_v56, %v3508_v57 }
 0x1d3   :  { %v803_v0 = vrot.slane %v796_v23, %v3508_v57 }
 0x1d4   :  { %v779_v1 = vcombine.high %v778_v45, %v778_v45  ;;  %v815_v10 = vcombine.high %v814_v58, %v814_v58 }
 0x1d5   :  { %v804_v29 = vcombine.high %v803_v0, %v803_v0 }
 0x1d6   :  { %v786_v17 = vrot.slane %v779_v1, %v3508_v57  ;;  %v822_v20 = vrot.slane %v815_v10, %v3508_v57 }
 0x1d8   :  { %v788_v30 = vadd.f32 %v786_v17, %v770_v11  ;;  %v823_v40 = vcombine.high %v822_v20, %v822_v20 }
 0x1da   :  { %v806_v38 = vadd.f32 %v804_v29, %v788_v30 }
 0x1dc   :  { %v825_v51 = vadd.f32 %v823_v40, %v806_v38 }
 0x210   :  { %v694_v52 = vpop.f32.mrb[4].mxu0  ;;  %v765_v60 = vpop.f32.mrb[4].mxu1 }
 0x211   :  { %v827_v12 = vcombine.high %v694_v52, %v694_v52  ;;  %v864_v13 = vcombine.high %v765_v60, %v765_v60  ;;  %v696_v26 = vpop.f32.mrb[5].mxu0  ;;  %v767_v43 = vpop.f32.mrb[5].mxu1 }
 0x212   :  { %v845_v44 = vcombine.high %v696_v26, %v696_v26  ;;  %v883_v16 = vcombine.high %v767_v43, %v767_v43 }
 0x213   :  { %v834_v53 = vrot.slane %v827_v12, %v3508_v57  ;;  %v871_v33 = vrot.slane %v864_v13, %v3508_v57 }
 0x214   :  { %v852_v63 = vrot.slane %v845_v44, %v3508_v57  ;;  %v890_v54 = vrot.slane %v883_v16, %v3508_v57 }
 0x215   :  { %v841_v25 = vrot.slane %v834_v53, %v3508_v57  ;;  %v878_v36 = vrot.slane %v871_v33, %v3508_v57 }
 0x216   :  { %v853_v39 = vcombine.high %v852_v63, %v852_v63  ;;  %v891_v8 = vcombine.high %v890_v54, %v890_v54 }
 0x217   :  { %v843_v62 = vadd.f32 %v841_v25, %v825_v51  ;;  %v879_v35 = vcombine.high %v878_v36, %v878_v36 }
 0x218   :  { %v860_v6 = vrot.slane %v853_v39, %v3508_v57  ;;  %v898_v24 = vrot.slane %v891_v8, %v3508_v57 }
 0x21a   :  { %v862_v37 = vadd.f32 %v860_v6, %v843_v62  ;;  %v899_v49 = vcombine.high %v898_v24, %v898_v24 }
 0x21c   :  { %v881_v47 = vadd.f32 %v879_v35, %v862_v37  ;;  %v1344_v35 = vsub.s32 0, %v3505_v50 }
 0x21e   :  { %v901_v55 = vadd.f32 %v899_v49, %v881_v47 }
 0x220   :  { %v903_v43 = vsel %vm902_vm0, %v901_v55, -inf }
 0x250   :  { %v980_v59 = vpop.f32.mrb[6].mxu0  ;;  %v1051_v61 = vpop.f32.mrb[6].mxu1 }
 0x251   :  { %v1224_v2 = vrot.slane %v1051_v61, %v3508_v57  ;;  %v982_v3 = vpop.f32.mrb[7].mxu0  ;;  %v1053_v7 = vpop.f32.mrb[7].mxu1  ;;  %v1198_v27 = vadd.f32 %v980_v59, %v485_v32 }
 0x252   :  { %v1206_v9 = vrot.slane %v982_v3, %v3508_v57  ;;  %v1242_v14 = vrot.slane %v1053_v7, %v3508_v57 }
 0x253   :  { %v1231_v15 = vrot.slane %v1224_v2, %v3508_v57 }
 0x254   :  { %v1207_v19 = vcombine.high %v1206_v9, %v1206_v9  ;;  %v1243_v21 = vcombine.high %v1242_v14, %v1242_v14 }
 0x255   :  { %v1232_v41 = vcombine.high %v1231_v15, %v1231_v15 }
 0x256   :  { %v1214_v28 = vrot.slane %v1207_v19, %v3508_v57  ;;  %v1250_v34 = vrot.slane %v1243_v21, %v3508_v57 }
 0x258   :  { %v1216_v42 = vadd.f32 %v1214_v28, %v1198_v27  ;;  %v1251_v48 = vcombine.high %v1250_v34, %v1250_v34 }
 0x25a   :  { %v1234_v31 = vadd.f32 %v1232_v41, %v1216_v42 }
 0x25c   :  { %v1253_v46 = vadd.f32 %v1251_v48, %v1234_v31 }
 0x290   :  { %v1122_v18 = vpop.f32.mrb[8].mxu0 }
 0x291   :  { %v1255_v5 = vcombine.high %v1122_v18, %v1122_v18  ;;  %v1193_v22 = vpop.f32.mrb[8].mxu1  ;;  %v1124_v23 = vpop.f32.mrb[9].mxu0 }
 0x292   :  { %v1292_v4 = vcombine.high %v1193_v22, %v1193_v22  ;;  %v1273_v56 = vcombine.high %v1124_v23, %v1124_v23  ;;  %v1195_v45 = vpop.f32.mrb[9].mxu1 }
 0x293   :  { %v1262_v58 = vrot.slane %v1255_v5, %v3508_v57  ;;  %v1311_v0 = vcombine.high %v1195_v45, %v1195_v45 }
 0x294   :  { %v1299_v32 = vrot.slane %v1292_v4, %v3508_v57  ;;  %v1280_v1 = vrot.slane %v1273_v56, %v3508_v57 }
 0x295   :  { %v1269_v10 = vrot.slane %v1262_v58, %v3508_v57  ;;  %v1318_v11 = vrot.slane %v1311_v0, %v3508_v57 }
 0x296   :  { %v1306_v17 = vrot.slane %v1299_v32, %v3508_v57  ;;  %v1281_v20 = vcombine.high %v1280_v1, %v1280_v1 }
 0x297   :  { %v1271_v29 = vadd.f32 %v1269_v10, %v1253_v46  ;;  %v1319_v30 = vcombine.high %v1318_v11, %v1318_v11 }
 0x298   :  { %v1288_v38 = vrot.slane %v1281_v20, %v3508_v57  ;;  %v1307_v51 = vcombine.high %v1306_v17, %v1306_v17 }
 0x299   :  { %v1326_v40 = vrot.slane %v1319_v30, %v3508_v57 }
 0x29a   :  { %v1290_v52 = vadd.f32 %v1288_v38, %v1271_v29 }
 0x29b   :  { %v1327_v12 = vcombine.high %v1326_v40, %v1326_v40 }
 0x29c   :  { %v1309_v60 = vadd.f32 %v1307_v51, %v1290_v52 }
 0x29e   :  { %v1329_v13 = vadd.f32 %v1327_v12, %v1309_v60 }
 0x2a0   :  { %v1330_v26 = vsel %vm902_vm0, %v1329_v13, -inf }
 0x2a1   :  { %1331 = vmax.xlane.f32.xlu0 %v1330_v26 }
 0x2a5   :  { %904 = vmax.xlane.f32.xlu0 %v903_v43 }
 0x32e   :  { %v1332_v44 = vpop.xlane.xlu0 %1331 }
 0x32f   :  { %v1333_v16 = vsub.f32 %v1329_v13, %v1332_v44 }
 0x331   :  { %v1334_v53 = vmul.f32 1.442695, %v1333_v16 }
 0x332   :  { %v905_v33 = vpop.xlane.xlu0 %904 }
 0x333   :  { %1942 = vpow2.f32 %v1334_v53  ;;  %v906_v63 = vsub.f32 %v901_v55, %v905_v33 }
 0x335   :  { %v907_v54 = vmul.f32 1.442695, %v906_v63 }
 0x337   :  { %1944 = vpow2.f32 %v907_v54 }
 0x33d   :  { %v1943_v57 = vpop.eup %1942 }
 0x33e   :  { %v1336_v25 = vsel %vm902_vm0, %v1943_v57, 0.0 }
 0x33f   :  { %1337 = vadd.xlane.f32.xlu1 %v1336_v25 }
 0x341   :  { %v1945_v36 = vpop.eup %1944 }
 0x342   :  { %v909_v39 = vsel %vm902_vm0, %v1945_v36, 0.0 }
 0x343   :  { %910 = vadd.xlane.f32.xlu1 %v909_v39 }
 0x3cc   :  { %v1338_v8 = vpop.xlane.xlu1 %1337 }
 0x3cd   :  { %1946 = vrcp.f32 %v1338_v8 }
 0x3d0   :  { %v911_v62 = vpop.xlane.xlu1 %910 }
 0x3d1   :  { %1948 = vrcp.f32 %v911_v62 }
 0x3d7   :  { %v1947_v6 = vpop.eup %1946 }
 0x3d8   :  { %v1340_v24 = vmul.f32 %v1947_v6, %v1943_v57 }
 0x3da   :  { %v1345_v49 = vrot.slane %v1340_v24, %v1344_v35 }
 0x3db   :  { %v1949_v37 = vpop.eup %1948 }
 0x3dc   :  { %v913_v47 = vmul.f32 %v1949_v37, %v1945_v36 }
 0x3de   :  { %v1347_v55 = vsel %vm902_vm0, %v913_v47, %v1345_v49 }
 0x3df   :  { %1348 = vst [vmem:[#allocation2] sm:$0x3] %v1347_v55 }
 0x3e0   :  { %1961 = shalt.err (!%p1958_p4)
}
 0x3e1   :  { %s1962_s27 = scalar_lea.hbm %s3563_s4, 32 }
 0x3e2   :  { %p1963_p5 = scmp.ne.s32.totalorder %s3563_s4, %s1962_s27  ;;  %p1966_p6 = scmp.lt.u32.totalorder %s1962_s27, %s3563_s4 }
 0x3e4   :  { %p1968_p7 = pnand %p1966_p6, %p1963_p5 }
 0x3e6   :  { %1971 = shalt.err (!%p1968_p7)
}
 0x3e7   :  { %1358 = dma.vmem_to_hbm [thread:$0]  %s1356_s23, 32, %s3563_s4, [#allocation3]  }
 0x3e8   :  { %1972 = dma.done.wait [#allocation3], 32  }
 0x3e9   :  { %1973 = vsyncadd [#allocation3], 4294967264 }
 0x3ea   :  { %1362 = vsyncpa [#allocation3], 1 }

</bundles_post_ra>
